<compile_context>
chip_gen: v5e
topology: v5e:2x2
jax: 0.10.0
libtpu: 0.0.40
codegen_flags: <defaults>
</compile_context>

<pallas_src>
import functools

import jax
import jax.numpy as jnp
from jax.experimental import pallas as pl
from jax.experimental.pallas import tpu as pltpu

IN_FEATS = 16       # node feature dim (= GRU hidden size)
HID_FEATS = 32      # GraphConv output dim (= GRU input size)
MPNN_FEATS = 16     # mpnn MLP output dim
N_LAYERS = 2        # message-passing rounds
OUT_FEATS = 16      # final g2v MLP output dim
CONV_FEATS = 32     # resnet11 stand-in feature width
N_PER_GRAPH = 8     # nodes per graph (adjacency image is 8x8)
N_GRAPHS = 2        # graphs per batched graph (= len(adj_list))
N_BRANCH = 2        # siamese branches

N_NODES_B = N_GRAPHS * N_PER_GRAPH            # 16 nodes per branch
N_TOTAL = N_BRANCH * N_NODES_B                # 32 nodes, both branches stacked
G_TOTAL = N_BRANCH * N_GRAPHS                 # 4 graphs total
PATCH_K = 16                                  # im2col K (9 real taps, padded)
N_PATCH = G_TOTAL * N_PER_GRAPH * N_PER_GRAPH  # 256 conv output positions
PAD_OUT = 128                                 # lane-dense output width
OUT_ROWS = 8                                  # sublane-padded output rows (4 real)

# ---- weight-slab row offsets (all multiples of 16 -> bf16 sublane-tile aligned) ---
GC_W_OFF = 0       # (16, 32)
GRU_WI_OFF = 16    # (32, 64)  input-half  gate cols [r | z | gi_n | 0]
GRU_WH_OFF = 48    # (16, 64)  hidden-half gate cols [r | z | 0 | gh_n]
M1_W1_OFF = 64     # (16, 16)
M1_W2_OFF = 80     # (16, 16)
CONV_W_OFF = 96    # (16, 32)  rows 9..15 zero
M2_W1A_OFF = 112   # (16, 16)  final-MLP layer-1, res_above block
M2_W1B_OFF = 128   # (32, 16)  final-MLP layer-1, res_below block
M2_W2_OFF = 160    # (16, 128) final-MLP layer-2, zero padded to 128 lanes
W_SLAB_ROWS = 176


# ------------------------------------------------------------- fused kernel ---

def _siamese_kernel(a_ref, x_ref, seg2_ref, patch_ref, pool_ref, w_ref, b_ref, o_ref):
    """Whole siamese forward (both branches) in one invocation."""
    f32, bf16 = jnp.float32, jnp.bfloat16
    H = IN_FEATS

    a = a_ref[...]             # (32, 32)  bf16 block-diag D^-1/2 A D^-1/2 (both branches)
    x0 = x_ref[...]            # (32, 16)  f32 node features (both branches stacked)
    seg2 = seg2_ref[...]       # (8, 64)   bf16 [seg | seg] sum-readout (rows 4..7 zero)
    patches = patch_ref[...]   # (256, 16) bf16 im2col of adjacency images (K padded)
    pool = pool_ref[...]       # (8, 256)  bf16 per-graph mean pool (rows 4..7 zero)

    # resident weight slab: static, sublane-aligned slices (no per-weight DMA)
    gc_w = w_ref[GC_W_OFF:GC_W_OFF + IN_FEATS, :HID_FEATS]
    gru_wi = w_ref[GRU_WI_OFF:GRU_WI_OFF + HID_FEATS, :4 * H]
    gru_wh = w_ref[GRU_WH_OFF:GRU_WH_OFF + H, :4 * H]
    m1_w1 = w_ref[M1_W1_OFF:M1_W1_OFF + IN_FEATS, :MPNN_FEATS]
    m1_w2 = w_ref[M1_W2_OFF:M1_W2_OFF + MPNN_FEATS, :MPNN_FEATS]
    conv_w = w_ref[CONV_W_OFF:CONV_W_OFF + PATCH_K, :CONV_FEATS]
    m2_w1a = w_ref[M2_W1A_OFF:M2_W1A_OFF + MPNN_FEATS, :OUT_FEATS]
    m2_w1b = w_ref[M2_W1B_OFF:M2_W1B_OFF + CONV_FEATS, :OUT_FEATS]
    m2_w2 = w_ref[M2_W2_OFF:M2_W2_OFF + OUT_FEATS, :PAD_OUT]

    # biases (f32), hoisted once
    gc_b = b_ref[0:1, :HID_FEATS]
    gru_b = b_ref[1:2, :4 * H]
    m1_b1 = b_ref[2:3, :MPNN_FEATS]
    m1_b2 = b_ref[3:4, :MPNN_FEATS]
    conv_b = b_ref[4:5, :CONV_FEATS]
    m2_b1 = b_ref[5:6, :OUT_FEATS]
    m2_b2 = b_ref[6:7, :PAD_OUT]

    def bdot(lhs, rhs):
        # bf16 x bf16 operands, f32 accumulation (single-pass MXU)
        return jnp.dot(lhs.astype(bf16), rhs.astype(bf16), preferred_element_type=f32)

    def graph_conv(x):
        # DGL GraphConv(norm='both', activation=relu): relu(A_hat @ (X @ W) + b)
        return jnp.maximum(bdot(a, bdot(x, gc_w)) + gc_b, 0.0)

    def gru_step(m, h):
        # one nn.GRU step, PyTorch gate order (r, z, n); six per-gate dots merged
        # into two independent 64-lane dots; gate split = cheap lane selects.
        g = bdot(m, gru_wi) + bdot(h, gru_wh) + gru_b          # (32, 64) f32
        r = jax.nn.sigmoid(g[:, 0:H])
        z = jax.nn.sigmoid(g[:, H:2 * H])
        n = jnp.tanh(g[:, 2 * H:3 * H] + r * g[:, 3 * H:4 * H])
        return (1.0 - z) * n + z * h

    # message passing, N_LAYERS rounds (unrolled at trace time)
    h = gru_step(graph_conv(x0), x0)
    for _ in range(N_LAYERS - 1):
        h = gru_step(graph_conv(h), h)

    # readout_nodes('h_0') + readout_nodes('h') == [seg|seg] @ MLP([feat ; h])
    stacked = jnp.concatenate([x0, h], axis=0)                 # (64, 16) sublane concat
    mlp = bdot(jnp.maximum(bdot(stacked, m1_w1) + m1_b1, 0.0), m1_w2) + m1_b2
    res_above = bdot(seg2, mlp)                                # (8, MPNN_FEATS)

    # resnet11 stand-in: 3x3 conv as im2col matmul -> ReLU -> per-graph mean pool
    y = jnp.maximum(bdot(patches, conv_w) + conv_b, 0.0)       # (256, 32)
    res_below = bdot(pool, y)                                  # (8, 32)

    # final MLP; concat([res_above, res_below], 1) folded into split weight blocks;
    # second layer zero padded to 128 lanes + 8 output rows -> single unmasked store.
    hid = jnp.maximum(bdot(res_above, m2_w1a) + bdot(res_below, m2_w1b) + m2_b1, 0.0)
    o_ref[...] = bdot(hid, m2_w2) + m2_b2


# ----------------------------------------------------------------- wrapper ---

def _g2v_fused_call(kp, a_bd, x, patches):
    vmem = pl.BlockSpec(memory_space=pltpu.MemorySpace.VMEM)
    return pl.pallas_call(
        _siamese_kernel,
        out_shape=jax.ShapeDtypeStruct((OUT_ROWS, PAD_OUT), jnp.float32),
        in_specs=[vmem] * 7,
        out_specs=vmem,
    )(a_bd, x, kp['seg2'], patches, kp['pool'], kp['w_slab'], kp['b_slab'])


def _im2col(imgs):
    """(B, G, 8, 8) adjacency images -> (B*G*64, 9) zero-padded 3x3 patches."""
    B, G, Hh, Ww = imgs.shape
    padded = jnp.pad(imgs.astype(jnp.float32), ((0, 0), (0, 0), (1, 1), (1, 1)))
    cols = jnp.stack([padded[:, :, di:di + Hh, dj:dj + Ww]
                      for di in range(3) for dj in range(3)], axis=-1)
    return cols.reshape(B * G * Hh * Ww, 9)


@jax.jit
def siamese_forward(kp, a1, a2, feats1, feats2, adj_imgs1, adj_imgs2):
    """Both g2v branches through one grid-less pallas_call."""
    f32, bf16 = jnp.float32, jnp.bfloat16
    n = N_NODES_B
    a_bd = jnp.zeros((N_TOTAL, N_TOTAL), f32)
    a_bd = a_bd.at[:n, :n].set(a1).at[n:, n:].set(a2)          # branch block-diag
    x = jnp.concatenate([feats1, feats2], axis=0)              # (32, 16) f32
    patches = _im2col(jnp.stack([adj_imgs1, adj_imgs2]))       # (256, 9)
    patches = jnp.pad(patches, ((0, 0), (0, PATCH_K - 9)))     # K padded to 16
    out = _g2v_fused_call(kp, a_bd.astype(bf16), x, patches.astype(bf16))
    out1 = out[0:N_GRAPHS, :OUT_FEATS]
    out2 = out[N_GRAPHS:G_TOTAL, :OUT_FEATS]
    return out1, out2


# ------------------------------------------------- parameter packing (once) ---

def init_params(key):
    """Logical (per-gate / per-layer) parameters, f32 — the 'torch' view."""
    ks = jax.random.split(key, 16)
    s = 0.1
    n = lambda k, sh: (s * jax.random.normal(k, sh)).astype(jnp.float32)
    return {
        'gc_w': n(ks[0], (IN_FEATS, HID_FEATS)),
        'gc_b': n(ks[1], (HID_FEATS,)),
        'w_ih': n(ks[2], (3, HID_FEATS, IN_FEATS)),   # GRU gates (r, z, n)
        'w_hh': n(ks[3], (3, IN_FEATS, IN_FEATS)),
        'b_ih': n(ks[4], (3, IN_FEATS)),
        'b_hh': n(ks[5], (3, IN_FEATS)),
        'm1_w1': n(ks[6], (IN_FEATS, MPNN_FEATS)),
        'm1_b1': n(ks[7], (MPNN_FEATS,)),
        'm1_w2': n(ks[8], (MPNN_FEATS, MPNN_FEATS)),
        'm1_b2': n(ks[9], (MPNN_FEATS,)),
        'conv_w': n(ks[10], (9, CONV_FEATS)),
        'conv_b': n(ks[11], (CONV_FEATS,)),
        'm2_w1': n(ks[12], (MPNN_FEATS + CONV_FEATS, OUT_FEATS)),
        'm2_b1': n(ks[13], (OUT_FEATS,)),
        'm2_w2': n(ks[14], (OUT_FEATS, OUT_FEATS)),
        'm2_b2': n(ks[15], (OUT_FEATS,)),
    }


def pack_kernel_params(p):
    """Pack all weights into one bf16 slab + one f32 bias slab + structural matrices."""
    f32 = jnp.float32
    H = IN_FEATS
    wi, wh = p['w_ih'], p['w_hh']
    # merged GRU weights: gate columns [r | z | gi_n | gh_n]
    gru_wi = jnp.concatenate(
        [wi[0], wi[1], wi[2], jnp.zeros((HID_FEATS, H), f32)], axis=1)   # (32, 64)
    gru_wh = jnp.concatenate(
        [wh[0], wh[1], jnp.zeros((H, H), f32), wh[2]], axis=1)           # (16, 64)
    gru_b = jnp.concatenate([p['b_ih'][0] + p['b_hh'][0],
                             p['b_ih'][1] + p['b_hh'][1],
                             p['b_ih'][2], p['b_hh'][2]])                # (64,)

    def put(slab, row, w):
        r, c = w.shape
        return slab.at[row:row + r, :c].set(w)

    w_slab = jnp.zeros((W_SLAB_ROWS, PAD_OUT), f32)
    w_slab = put(w_slab, GC_W_OFF, p['gc_w'])
    w_slab = put(w_slab, GRU_WI_OFF, gru_wi)
    w_slab = put(w_slab, GRU_WH_OFF, gru_wh)
    w_slab = put(w_slab, M1_W1_OFF, p['m1_w1'])
    w_slab = put(w_slab, M1_W2_OFF, p['m1_w2'])
    w_slab = put(w_slab, CONV_W_OFF, p['conv_w'])            # rows 9..15 stay zero
    w_slab = put(w_slab, M2_W1A_OFF, p['m2_w1'][:MPNN_FEATS])
    w_slab = put(w_slab, M2_W1B_OFF, p['m2_w1'][MPNN_FEATS:])
    w_slab = put(w_slab, M2_W2_OFF, p['m2_w2'])              # lanes 16..127 stay zero

    b_slab = jnp.zeros((8, PAD_OUT), f32)
    b_slab = b_slab.at[0, :HID_FEATS].set(p['gc_b'])
    b_slab = b_slab.at[1, :4 * H].set(gru_b)
    b_slab = b_slab.at[2, :MPNN_FEATS].set(p['m1_b1'])
    b_slab = b_slab.at[3, :MPNN_FEATS].set(p['m1_b2'])
    b_slab = b_slab.at[4, :CONV_FEATS].set(p['conv_b'])
    b_slab = b_slab.at[5, :OUT_FEATS].set(p['m2_b1'])
    b_slab = b_slab.at[6, :OUT_FEATS].set(p['m2_b2'])

    # structural readout / pooling matrices for the fixed branch-major node order,
    # row-padded to 8 so the whole tail of the kernel works on full 8-row tiles.
    seg = jnp.kron(jnp.eye(G_TOTAL, dtype=f32),
                   jnp.ones((1, N_PER_GRAPH), f32))                       # (4, 32)
    seg2 = jnp.concatenate([seg, seg], axis=1)                            # (4, 64)
    pool = jnp.kron(jnp.eye(G_TOTAL, dtype=f32),
                    jnp.full((1, N_PER_GRAPH ** 2), 1.0 / N_PER_GRAPH ** 2, f32))
    seg2 = jnp.pad(seg2, ((0, OUT_ROWS - G_TOTAL), (0, 0)))               # (8, 64)
    pool = jnp.pad(pool, ((0, OUT_ROWS - G_TOTAL), (0, 0)))               # (8, 256)

    return {'w_slab': w_slab.astype(jnp.bfloat16),
            'b_slab': b_slab,
            'seg2': seg2.astype(jnp.bfloat16),
            'pool': pool.astype(jnp.bfloat16)}


# ------------------------------------------------------ pure-JAX reference ---

def _g2v_ref(p, a, feat, seg, patches):
    dot = functools.partial(jnp.dot, precision=jax.lax.Precision.HIGHEST)

    def gconv(x):
        return jnp.maximum(dot(a, dot(x, p['gc_w'])) + p['gc_b'], 0.0)

    def gru(x, h):
        r = jax.nn.sigmoid(dot(x, p['w_ih'][0]) + p['b_ih'][0]
                           + dot(h, p['w_hh'][0]) + p['b_hh'][0])
        z = jax.nn.sigmoid(dot(x, p['w_ih'][1]) + p['b_ih'][1]
                           + dot(h, p['w_hh'][1]) + p['b_hh'][1])
        n = jnp.tanh(dot(x, p['w_ih'][2]) + p['b_ih'][2]
                     + r * (dot(h, p['w_hh'][2]) + p['b_hh'][2]))
        return (1.0 - z) * n + z * h

    h = gru(gconv(feat), feat)
    for _ in range(N_LAYERS - 1):
        h = gru(gconv(h), h)

    def mlp1(x):
        return dot(jnp.maximum(dot(x, p['m1_w1']) + p['m1_b1'], 0.0),
                   p['m1_w2']) + p['m1_b2']

    res_above = dot(seg, mlp1(feat) + mlp1(h))                       # (G, 16)
    y = jnp.maximum(dot(patches, p['conv_w']) + p['conv_b'], 0.0)    # (G*64, 32)
    res_below = y.reshape(N_GRAPHS, N_PER_GRAPH ** 2, CONV_FEATS).mean(axis=1)
    res = jnp.concatenate([res_above, res_below], axis=1)            # (G, 48)
    hid = jnp.maximum(dot(res, p['m2_w1']) + p['m2_b1'], 0.0)
    return dot(hid, p['m2_w2']) + p['m2_b2']


# ------------------------------------------------------------------- setup ---

def make_graph(key):
    """Batched graph of N_GRAPHS graphs -> (normalized block-diag A, adjacency images)."""
    keys = jax.random.split(key, N_GRAPHS)
    blocks = []
    for k in keys:
        a = (jax.random.uniform(k, (N_PER_GRAPH, N_PER_GRAPH)) > 0.6).astype(jnp.float32)
        a = jnp.maximum(a, a.T)
        a = jnp.maximum(a, jnp.eye(N_PER_GRAPH, dtype=jnp.float32))  # self loops
        blocks.append(a)
    A = jax.scipy.linalg.block_diag(*blocks)
    dinv = 1.0 / jnp.sqrt(A.sum(axis=1))
    a_norm = (A * dinv[:, None] * dinv[None, :]).astype(jnp.float32)
    return a_norm, jnp.stack(blocks)


if __name__ == "__main__":
    key = jax.random.PRNGKey(0)
    k_par, k_g1, k_g2, k_f1, k_f2 = jax.random.split(key, 5)

    params = init_params(k_par)
    kparams = pack_kernel_params(params)      # packed once, outside the hot path

    a1, adj_imgs1 = make_graph(k_g1)
    a2, adj_imgs2 = make_graph(k_g2)
    feats1 = jax.random.normal(k_f1, (N_NODES_B, IN_FEATS), jnp.float32)
    feats2 = jax.random.normal(k_f2, (N_NODES_B, IN_FEATS), jnp.float32)

    out1, out2 = siamese_forward(kparams, a1, a2, feats1, feats2, adj_imgs1, adj_imgs2)
    jax.block_until_ready((out1, out2))

    assert out1.shape == (N_GRAPHS, OUT_FEATS) and out2.shape == (N_GRAPHS, OUT_FEATS)
    assert bool(jnp.all(jnp.isfinite(out1))) and bool(jnp.all(jnp.isfinite(out2)))

    # tolerance-asserted pure-JAX f32 reference (tolerance covers bf16 matmul operands)
    seg_b = jnp.kron(jnp.eye(N_GRAPHS, dtype=jnp.float32),
                     jnp.ones((1, N_PER_GRAPH), jnp.float32))       # (2, 16)
    patches_all = _im2col(jnp.stack([adj_imgs1, adj_imgs2]))        # (256, 9)
    npatch_b = N_GRAPHS * N_PER_GRAPH ** 2
    ref1 = _g2v_ref(params, a1, feats1, seg_b, patches_all[:npatch_b])
    ref2 = _g2v_ref(params, a2, feats2, seg_b, patches_all[npatch_b:])
    assert jnp.allclose(out1, ref1, rtol=3e-2, atol=3e-2), "branch-1 mismatch vs reference"
    assert jnp.allclose(out2, ref2, rtol=3e-2, atol=3e-2), "branch-2 mismatch vs reference"

    print("KERNEL_OK")
</pallas_src>

<mosaic_0001>
module attributes {stable_mosaic.version = 11 : i64} {
  func.func @_siamese_kernel(%arg0: memref<32x32xbf16, #tpu.memory_space<vmem>>, %arg1: memref<32x16xf32, #tpu.memory_space<vmem>>, %arg2: memref<8x64xbf16, #tpu.memory_space<vmem>>, %arg3: memref<256x16xbf16, #tpu.memory_space<vmem>>, %arg4: memref<8x256xbf16, #tpu.memory_space<vmem>>, %arg5: memref<176x128xbf16, #tpu.memory_space<vmem>>, %arg6: memref<8x128xf32, #tpu.memory_space<vmem>>, %arg7: memref<8x128xf32, #tpu.memory_space<vmem>>) attributes {dimension_semantics = [], scalar_prefetch = 0 : i64, scratch_operands = 0 : i64, tpu.core_type = #tpu.core_type<tc>} {
    %c0 = arith.constant 0 : index
    %c0_0 = arith.constant 0 : index
    %0 = vector.load %arg0[%c0, %c0_0] : memref<32x32xbf16, #tpu.memory_space<vmem>>, vector<32x32xbf16>
    %c0_1 = arith.constant 0 : index
    %c0_2 = arith.constant 0 : index
    %1 = vector.load %arg1[%c0_1, %c0_2] : memref<32x16xf32, #tpu.memory_space<vmem>>, vector<32x16xf32>
    %c0_3 = arith.constant 0 : index
    %c0_4 = arith.constant 0 : index
    %2 = vector.load %arg2[%c0_3, %c0_4] : memref<8x64xbf16, #tpu.memory_space<vmem>>, vector<8x64xbf16>
    %c0_5 = arith.constant 0 : index
    %c0_6 = arith.constant 0 : index
    %3 = vector.load %arg3[%c0_5, %c0_6] : memref<256x16xbf16, #tpu.memory_space<vmem>>, vector<256x16xbf16>
    %c0_7 = arith.constant 0 : index
    %c0_8 = arith.constant 0 : index
    %4 = vector.load %arg4[%c0_7, %c0_8] : memref<8x256xbf16, #tpu.memory_space<vmem>>, vector<8x256xbf16>
    %c0_9 = arith.constant 0 : index
    %c0_10 = arith.constant 0 : index
    %5 = vector.load %arg5[%c0_9, %c0_10] : memref<176x128xbf16, #tpu.memory_space<vmem>>, vector<16x32xbf16>
    %c16 = arith.constant 16 : index
    %c0_11 = arith.constant 0 : index
    %6 = vector.load %arg5[%c16, %c0_11] : memref<176x128xbf16, #tpu.memory_space<vmem>>, vector<32x64xbf16>
    %c48 = arith.constant 48 : index
    %c0_12 = arith.constant 0 : index
    %7 = vector.load %arg5[%c48, %c0_12] : memref<176x128xbf16, #tpu.memory_space<vmem>>, vector<16x64xbf16>
    %c64 = arith.constant 64 : index
    %c0_13 = arith.constant 0 : index
    %8 = vector.load %arg5[%c64, %c0_13] : memref<176x128xbf16, #tpu.memory_space<vmem>>, vector<16x16xbf16>
    %c80 = arith.constant 80 : index
    %c0_14 = arith.constant 0 : index
    %9 = vector.load %arg5[%c80, %c0_14] : memref<176x128xbf16, #tpu.memory_space<vmem>>, vector<16x16xbf16>
    %c96 = arith.constant 96 : index
    %c0_15 = arith.constant 0 : index
    %10 = vector.load %arg5[%c96, %c0_15] : memref<176x128xbf16, #tpu.memory_space<vmem>>, vector<16x32xbf16>
    %c112 = arith.constant 112 : index
    %c0_16 = arith.constant 0 : index
    %11 = vector.load %arg5[%c112, %c0_16] : memref<176x128xbf16, #tpu.memory_space<vmem>>, vector<16x16xbf16>
    %c128 = arith.constant 128 : index
    %c0_17 = arith.constant 0 : index
    %12 = vector.load %arg5[%c128, %c0_17] : memref<176x128xbf16, #tpu.memory_space<vmem>>, vector<32x16xbf16>
    %c160 = arith.constant 160 : index
    %c0_18 = arith.constant 0 : index
    %13 = vector.load %arg5[%c160, %c0_18] : memref<176x128xbf16, #tpu.memory_space<vmem>>, vector<16x128xbf16>
    %c0_19 = arith.constant 0 : index
    %c0_20 = arith.constant 0 : index
    %14 = vector.load %arg6[%c0_19, %c0_20] : memref<8x128xf32, #tpu.memory_space<vmem>>, vector<1x32xf32>
    %c1 = arith.constant 1 : index
    %c0_21 = arith.constant 0 : index
    %15 = vector.load %arg6[%c1, %c0_21] : memref<8x128xf32, #tpu.memory_space<vmem>>, vector<1x64xf32>
    %c2 = arith.constant 2 : index
    %c0_22 = arith.constant 0 : index
    %16 = vector.load %arg6[%c2, %c0_22] : memref<8x128xf32, #tpu.memory_space<vmem>>, vector<1x16xf32>
    %c3 = arith.constant 3 : index
    %c0_23 = arith.constant 0 : index
    %17 = vector.load %arg6[%c3, %c0_23] : memref<8x128xf32, #tpu.memory_space<vmem>>, vector<1x16xf32>
    %c4 = arith.constant 4 : index
    %c0_24 = arith.constant 0 : index
    %18 = vector.load %arg6[%c4, %c0_24] : memref<8x128xf32, #tpu.memory_space<vmem>>, vector<1x32xf32>
    %c5 = arith.constant 5 : index
    %c0_25 = arith.constant 0 : index
    %19 = vector.load %arg6[%c5, %c0_25] : memref<8x128xf32, #tpu.memory_space<vmem>>, vector<1x16xf32>
    %c6 = arith.constant 6 : index
    %c0_26 = arith.constant 0 : index
    %20 = vector.load %arg6[%c6, %c0_26] : memref<8x128xf32, #tpu.memory_space<vmem>>, vector<1x128xf32>
    %21 = arith.truncf %1 : vector<32x16xf32> to vector<32x16xbf16>
    %cst = arith.constant dense<0.000000e+00> : vector<32x32xf32>
    %22 = tpu.matmul %21, %5, %cst {dimension_numbers = #tpu.dot_dimension_numbers<[1], [0], [0], [1], [0, 0, 1, 1], [], []>} : vector<32x16xbf16>, vector<16x32xbf16>, vector<32x32xf32> -> vector<32x32xf32>
    %23 = arith.truncf %22 : vector<32x32xf32> to vector<32x32xbf16>
    %cst_27 = arith.constant dense<0.000000e+00> : vector<32x32xf32>
    %24 = tpu.matmul %0, %23, %cst_27 {dimension_numbers = #tpu.dot_dimension_numbers<[1], [0], [0], [1], [0, 0, 1, 1], [], []>} : vector<32x32xbf16>, vector<32x32xbf16>, vector<32x32xf32> -> vector<32x32xf32>
    %25 = vector.broadcast %14 : vector<1x32xf32> to vector<32x32xf32>
    %26 = arith.addf %24, %25 : vector<32x32xf32>
    %cst_28 = arith.constant 0.000000e+00 : f32
    %27 = vector.broadcast %cst_28 : f32 to vector<32x32xf32>
    %28 = arith.maximumf %26, %27 : vector<32x32xf32>
    %29 = arith.truncf %28 : vector<32x32xf32> to vector<32x32xbf16>
    %cst_29 = arith.constant dense<0.000000e+00> : vector<32x64xf32>
    %30 = tpu.matmul %29, %6, %cst_29 {dimension_numbers = #tpu.dot_dimension_numbers<[1], [0], [0], [1], [0, 0, 1, 1], [], []>} : vector<32x32xbf16>, vector<32x64xbf16>, vector<32x64xf32> -> vector<32x64xf32>
    %31 = arith.truncf %1 : vector<32x16xf32> to vector<32x16xbf16>
    %cst_30 = arith.constant dense<0.000000e+00> : vector<32x64xf32>
    %32 = tpu.matmul %31, %7, %cst_30 {dimension_numbers = #tpu.dot_dimension_numbers<[1], [0], [0], [1], [0, 0, 1, 1], [], []>} : vector<32x16xbf16>, vector<16x64xbf16>, vector<32x64xf32> -> vector<32x64xf32>
    %33 = arith.addf %30, %32 : vector<32x64xf32>
    %34 = vector.broadcast %15 : vector<1x64xf32> to vector<32x64xf32>
    %35 = arith.addf %33, %34 : vector<32x64xf32>
    %36 = vector.extract_strided_slice %35 {offsets = [0, 0], sizes = [32, 16], strides = [1, 1]} : vector<32x64xf32> to vector<32x16xf32>
    %37 = arith.negf %36 : vector<32x16xf32>
    %38 = math.exp %37 : vector<32x16xf32>
    %cst_31 = arith.constant 1.000000e+00 : f32
    %39 = vector.broadcast %cst_31 : f32 to vector<32x16xf32>
    %40 = arith.addf %39, %38 : vector<32x16xf32>
    %41 = arith.divf %39, %40 : vector<32x16xf32>
    %42 = vector.extract_strided_slice %35 {offsets = [0, 16], sizes = [32, 16], strides = [1, 1]} : vector<32x64xf32> to vector<32x16xf32>
    %43 = arith.negf %42 : vector<32x16xf32>
    %44 = math.exp %43 : vector<32x16xf32>
    %cst_32 = arith.constant 1.000000e+00 : f32
    %45 = vector.broadcast %cst_32 : f32 to vector<32x16xf32>
    %46 = arith.addf %45, %44 : vector<32x16xf32>
    %47 = arith.divf %45, %46 : vector<32x16xf32>
    %48 = vector.extract_strided_slice %35 {offsets = [0, 32], sizes = [32, 16], strides = [1, 1]} : vector<32x64xf32> to vector<32x16xf32>
    %49 = vector.extract_strided_slice %35 {offsets = [0, 48], sizes = [32, 16], strides = [1, 1]} : vector<32x64xf32> to vector<32x16xf32>
    %50 = arith.mulf %41, %49 : vector<32x16xf32>
    %51 = arith.addf %48, %50 : vector<32x16xf32>
    %52 = math.tanh %51 : vector<32x16xf32>
    %cst_33 = arith.constant 1.000000e+00 : f32
    %53 = vector.broadcast %cst_33 : f32 to vector<32x16xf32>
    %54 = arith.subf %53, %47 : vector<32x16xf32>
    %55 = arith.mulf %54, %52 : vector<32x16xf32>
    %56 = arith.mulf %47, %1 : vector<32x16xf32>
    %57 = arith.addf %55, %56 : vector<32x16xf32>
    %58 = arith.truncf %57 : vector<32x16xf32> to vector<32x16xbf16>
    %cst_34 = arith.constant dense<0.000000e+00> : vector<32x32xf32>
    %59 = tpu.matmul %58, %5, %cst_34 {dimension_numbers = #tpu.dot_dimension_numbers<[1], [0], [0], [1], [0, 0, 1, 1], [], []>} : vector<32x16xbf16>, vector<16x32xbf16>, vector<32x32xf32> -> vector<32x32xf32>
    %60 = arith.truncf %59 : vector<32x32xf32> to vector<32x32xbf16>
    %cst_35 = arith.constant dense<0.000000e+00> : vector<32x32xf32>
    %61 = tpu.matmul %0, %60, %cst_35 {dimension_numbers = #tpu.dot_dimension_numbers<[1], [0], [0], [1], [0, 0, 1, 1], [], []>} : vector<32x32xbf16>, vector<32x32xbf16>, vector<32x32xf32> -> vector<32x32xf32>
    %62 = vector.broadcast %14 : vector<1x32xf32> to vector<32x32xf32>
    %63 = arith.addf %61, %62 : vector<32x32xf32>
    %cst_36 = arith.constant 0.000000e+00 : f32
    %64 = vector.broadcast %cst_36 : f32 to vector<32x32xf32>
    %65 = arith.maximumf %63, %64 : vector<32x32xf32>
    %66 = arith.truncf %65 : vector<32x32xf32> to vector<32x32xbf16>
    %cst_37 = arith.constant dense<0.000000e+00> : vector<32x64xf32>
    %67 = tpu.matmul %66, %6, %cst_37 {dimension_numbers = #tpu.dot_dimension_numbers<[1], [0], [0], [1], [0, 0, 1, 1], [], []>} : vector<32x32xbf16>, vector<32x64xbf16>, vector<32x64xf32> -> vector<32x64xf32>
    %68 = arith.truncf %57 : vector<32x16xf32> to vector<32x16xbf16>
    %cst_38 = arith.constant dense<0.000000e+00> : vector<32x64xf32>
    %69 = tpu.matmul %68, %7, %cst_38 {dimension_numbers = #tpu.dot_dimension_numbers<[1], [0], [0], [1], [0, 0, 1, 1], [], []>} : vector<32x16xbf16>, vector<16x64xbf16>, vector<32x64xf32> -> vector<32x64xf32>
    %70 = arith.addf %67, %69 : vector<32x64xf32>
    %71 = vector.broadcast %15 : vector<1x64xf32> to vector<32x64xf32>
    %72 = arith.addf %70, %71 : vector<32x64xf32>
    %73 = vector.extract_strided_slice %72 {offsets = [0, 0], sizes = [32, 16], strides = [1, 1]} : vector<32x64xf32> to vector<32x16xf32>
    %74 = arith.negf %73 : vector<32x16xf32>
    %75 = math.exp %74 : vector<32x16xf32>
    %cst_39 = arith.constant 1.000000e+00 : f32
    %76 = vector.broadcast %cst_39 : f32 to vector<32x16xf32>
    %77 = arith.addf %76, %75 : vector<32x16xf32>
    %78 = arith.divf %76, %77 : vector<32x16xf32>
    %79 = vector.extract_strided_slice %72 {offsets = [0, 16], sizes = [32, 16], strides = [1, 1]} : vector<32x64xf32> to vector<32x16xf32>
    %80 = arith.negf %79 : vector<32x16xf32>
    %81 = math.exp %80 : vector<32x16xf32>
    %cst_40 = arith.constant 1.000000e+00 : f32
    %82 = vector.broadcast %cst_40 : f32 to vector<32x16xf32>
    %83 = arith.addf %82, %81 : vector<32x16xf32>
    %84 = arith.divf %82, %83 : vector<32x16xf32>
    %85 = vector.extract_strided_slice %72 {offsets = [0, 32], sizes = [32, 16], strides = [1, 1]} : vector<32x64xf32> to vector<32x16xf32>
    %86 = vector.extract_strided_slice %72 {offsets = [0, 48], sizes = [32, 16], strides = [1, 1]} : vector<32x64xf32> to vector<32x16xf32>
    %87 = arith.mulf %78, %86 : vector<32x16xf32>
    %88 = arith.addf %85, %87 : vector<32x16xf32>
    %89 = math.tanh %88 : vector<32x16xf32>
    %cst_41 = arith.constant 1.000000e+00 : f32
    %90 = vector.broadcast %cst_41 : f32 to vector<32x16xf32>
    %91 = arith.subf %90, %84 : vector<32x16xf32>
    %92 = arith.mulf %91, %89 : vector<32x16xf32>
    %93 = arith.mulf %84, %57 : vector<32x16xf32>
    %94 = arith.addf %92, %93 : vector<32x16xf32>
    %95 = tpu.concatenate %1, %94 in 0 : vector<32x16xf32>, vector<32x16xf32> -> vector<64x16xf32>
    %96 = arith.truncf %95 : vector<64x16xf32> to vector<64x16xbf16>
    %cst_42 = arith.constant dense<0.000000e+00> : vector<64x16xf32>
    %97 = tpu.matmul %96, %8, %cst_42 {dimension_numbers = #tpu.dot_dimension_numbers<[1], [0], [0], [1], [0, 0, 1, 1], [], []>} : vector<64x16xbf16>, vector<16x16xbf16>, vector<64x16xf32> -> vector<64x16xf32>
    %98 = vector.broadcast %16 : vector<1x16xf32> to vector<64x16xf32>
    %99 = arith.addf %97, %98 : vector<64x16xf32>
    %cst_43 = arith.constant 0.000000e+00 : f32
    %100 = vector.broadcast %cst_43 : f32 to vector<64x16xf32>
    %101 = arith.maximumf %99, %100 : vector<64x16xf32>
    %102 = arith.truncf %101 : vector<64x16xf32> to vector<64x16xbf16>
    %cst_44 = arith.constant dense<0.000000e+00> : vector<64x16xf32>
    %103 = tpu.matmul %102, %9, %cst_44 {dimension_numbers = #tpu.dot_dimension_numbers<[1], [0], [0], [1], [0, 0, 1, 1], [], []>} : vector<64x16xbf16>, vector<16x16xbf16>, vector<64x16xf32> -> vector<64x16xf32>
    %104 = vector.broadcast %17 : vector<1x16xf32> to vector<64x16xf32>
    %105 = arith.addf %103, %104 : vector<64x16xf32>
    %106 = arith.truncf %105 : vector<64x16xf32> to vector<64x16xbf16>
    %cst_45 = arith.constant dense<0.000000e+00> : vector<8x16xf32>
    %107 = tpu.matmul %2, %106, %cst_45 {dimension_numbers = #tpu.dot_dimension_numbers<[1], [0], [0], [1], [0, 0, 1, 1], [], []>} : vector<8x64xbf16>, vector<64x16xbf16>, vector<8x16xf32> -> vector<8x16xf32>
    %cst_46 = arith.constant dense<0.000000e+00> : vector<256x32xf32>
    %108 = tpu.matmul %3, %10, %cst_46 {dimension_numbers = #tpu.dot_dimension_numbers<[1], [0], [0], [1], [0, 0, 1, 1], [], []>} : vector<256x16xbf16>, vector<16x32xbf16>, vector<256x32xf32> -> vector<256x32xf32>
    %109 = vector.broadcast %18 : vector<1x32xf32> to vector<256x32xf32>
    %110 = arith.addf %108, %109 : vector<256x32xf32>
    %cst_47 = arith.constant 0.000000e+00 : f32
    %111 = vector.broadcast %cst_47 : f32 to vector<256x32xf32>
    %112 = arith.maximumf %110, %111 : vector<256x32xf32>
    %113 = arith.truncf %112 : vector<256x32xf32> to vector<256x32xbf16>
    %cst_48 = arith.constant dense<0.000000e+00> : vector<8x32xf32>
    %114 = tpu.matmul %4, %113, %cst_48 {dimension_numbers = #tpu.dot_dimension_numbers<[1], [0], [0], [1], [0, 0, 1, 1], [], []>} : vector<8x256xbf16>, vector<256x32xbf16>, vector<8x32xf32> -> vector<8x32xf32>
    %115 = arith.truncf %107 : vector<8x16xf32> to vector<8x16xbf16>
    %cst_49 = arith.constant dense<0.000000e+00> : vector<8x16xf32>
    %116 = tpu.matmul %115, %11, %cst_49 {dimension_numbers = #tpu.dot_dimension_numbers<[1], [0], [0], [1], [0, 0, 1, 1], [], []>} : vector<8x16xbf16>, vector<16x16xbf16>, vector<8x16xf32> -> vector<8x16xf32>
    %117 = arith.truncf %114 : vector<8x32xf32> to vector<8x32xbf16>
    %cst_50 = arith.constant dense<0.000000e+00> : vector<8x16xf32>
    %118 = tpu.matmul %117, %12, %cst_50 {dimension_numbers = #tpu.dot_dimension_numbers<[1], [0], [0], [1], [0, 0, 1, 1], [], []>} : vector<8x32xbf16>, vector<32x16xbf16>, vector<8x16xf32> -> vector<8x16xf32>
    %119 = arith.addf %116, %118 : vector<8x16xf32>
    %120 = vector.broadcast %19 : vector<1x16xf32> to vector<8x16xf32>
    %121 = arith.addf %119, %120 : vector<8x16xf32>
    %cst_51 = arith.constant 0.000000e+00 : f32
    %122 = vector.broadcast %cst_51 : f32 to vector<8x16xf32>
    %123 = arith.maximumf %121, %122 : vector<8x16xf32>
    %124 = arith.truncf %123 : vector<8x16xf32> to vector<8x16xbf16>
    %cst_52 = arith.constant dense<0.000000e+00> : vector<8x128xf32>
    %125 = tpu.matmul %124, %13, %cst_52 {dimension_numbers = #tpu.dot_dimension_numbers<[1], [0], [0], [1], [0, 0, 1, 1], [], []>} : vector<8x16xbf16>, vector<16x128xbf16>, vector<8x128xf32> -> vector<8x128xf32>
    %126 = vector.broadcast %20 : vector<1x128xf32> to vector<8x128xf32>
    %127 = arith.addf %125, %126 : vector<8x128xf32>
    %c0_53 = arith.constant 0 : index
    %c0_54 = arith.constant 0 : index
    %128 = vector.load %arg7[%c0_53, %c0_54] : memref<8x128xf32, #tpu.memory_space<vmem>>, vector<8x128xf32>
    tpu.vector_store %arg7[%c0_53, %c0_54], %127 {strides = array<i32>} : memref<8x128xf32, #tpu.memory_space<vmem>>, vector<8x128xf32>,
    return
  }
}

</mosaic_0001>

<bundles_post_ra>
// kernel: siamese_forward.1
= control target key start
LH: loop header
LB: loop body
LE: loop exit
PB: predicated region body
PF: predicated region fallthrough
CT: control target
= control target key end

     0   :  { %vm106_vm0 = vcmask 130048   ;;  %vm145_vm1 = vcmask 261120   ;;  %s1472_s23 = smov 80   ;;  %s1473_s24 = smov 32   ;;  %s1924_s5 = inlined_call_operand.vmem [shape: bf16[176,128], index: 5, kind: input, shape index: {}]   ;;  %s1925_s1 = inlined_call_operand.vmem [shape: f32[32,16], index: 1, kind: input, shape index: {}]   ;;  %s1926_s6 = inlined_call_operand.vmem [shape: f32[8,128], index: 6, kind: input, shape index: {}]   ;;  %s1927_s0 = inlined_call_operand.vmem [shape: bf16[32,32], index: 0, kind: input, shape index: {}]   ;;  %s1928_s3 = inlined_call_operand.vmem [shape: bf16[256,16], index: 3, kind: input, shape index: {}]   ;;  %s1929_s4 = inlined_call_operand.vmem [shape: bf16[8,256], index: 4, kind: input, shape index: {}]   ;;  %s1930_s2 = inlined_call_operand.vmem [shape: bf16[8,64], index: 2, kind: input, shape index: {}]   ;;  %s1931_s7 = inlined_call_operand.vmem [shape: f32[8,128], index: 7, kind: output, shape index: {}]  }
   0x1   :  { %v1388_v0 = vld [vmem:[%s1924_s5] sm:$0xff]  ;;  %v1527_v2 = vld [vmem:[%s1925_s1 + $0x8] sm:$0xff]  ;;  %v1538_v4 = vld [vmem:[%s1925_s1 + $0x10] sm:$0xff]  ;;  %s1474_s25 = smov 16   ;;  %s1475_s26 = smov 112  }
   0x2   :  { %v1522_v1 = vld [vmem:[%s1925_s1] sm:$0xff]  ;;  %120 = vmatpush.bf16.msra.mxu1 %v1388_v0  ;;  %v1543_v5 = vld [vmem:[%s1925_s1 + $0x18] sm:$0xff]  ;;  %v1561_v14 = vld [vmem:[%s1927_s0 + $0x8] sm:$0xff] }
   0x3   :  { %v1531_v3 = vpack.c.bf16 %v1527_v2, %v1522_v1  ;;  %v1547_v6 = vpack.c.bf16 %v1543_v5, %v1538_v4  ;;  %v1554_v13 = vld [vmem:[%s1927_s0] sm:$0xff]  ;;  %v1390_v15 = vld [vmem:[%s1924_s5 + $0x10] sm:$0xff]  ;;  %v1391_v16 = vld [vmem:[%s1924_s5 + $0x18] sm:$0xff] }
   0x4   :  { %1400 = vmatpush.bf16.msra.mxu3 %v1390_v15  ;;  %190 = vmatpush.bf16.msra.mxu0 %v1391_v16  ;;  %v1389_v17 = vld [vmem:[%s1924_s5 + $0x8] sm:$0xff]  ;;  %v1581_v19 = vld [vmem:[%s1926_s6] ss:$0 sm:$0xff]  ;;  %v1592_v34 = vld [vmem:[%s1926_s6 + $0x1] ss:$0 sm:$0xff] }
   0x5   :  { %1206 = vmatmul.msk.bf16.vlgmr.msra.gmra.mxu1 %vm106_vm0, %v1531_v3  ;;  %1399 = vmatpush.bf16.msra.mxu2 %v1391_v16 }
   0x7   :  { %1222 = vmatmul.msk.bf16.vlgmr.msra.gmra.mxu0 %vm106_vm0, %v1531_v3 }
   0x8   :  { %433 = vmatpush.bf16.msrb.mxu0 %v1388_v0  ;;  %1401 = vmatpush.bf16.msra.mxu3 %v1389_v17 }
   0x9   :  { %1223 = vmatmul.msk.bf16.vlgmr.msra.gmra.mxu2 %vm106_vm0, %v1547_v6 }
   0xc   :  { %503 = vmatpush.bf16.msrb.mxu3 %v1390_v15 }
  0x10   :  { %504 = vmatpush.bf16.msrb.mxu3 %v1389_v17 }
  0x15   :  { %1207 = vmatmul.msk.bf16.gmra.mxu1 %vm106_vm0, %v1547_v6 }
  0x82   :  { %v122_v7 = vpop.f32.mrf.mxu1 }
  0x84   :  { %v192_v33 = vpop.f32.mrf.mxu0 }
  0x8a   :  { %v124_v8 = vpop.f32.mrf.mxu1 }
  0x8b   :  { %v132_v12 = vpack.c.bf16 %v124_v8, %v122_v7 }
  0x8c   :  { %v194_v38 = vpop.f32.mrf.mxu0  ;;  %v197_v42 = vpop.f32.mrf.mxu2 }
  0x92   :  { %v127_v9 = vpop.f32.mrf.mxu1 }
  0x94   :  { %v199_v46 = vpop.f32.mrf.mxu2 }
  0x9a   :  { %v129_v10 = vpop.f32.mrf.mxu1 }
  0x9b   :  { %v133_v11 = vpack.c.bf16 %v129_v10, %v127_v9 }
  0x9d   :  { %158 = vmatpush.bf16.msrb.mxu1 %v133_v11 }
  0xa1   :  { %159 = vmatpush.bf16.msrb.mxu1 %v132_v12 }
  0xa4   :  { %1216 = vmatmul.msk.bf16.vlgmr.msrb.gmra.mxu1 %vm145_vm1, %v1554_v13 }
  0xa5   :  { %226 = vmatpush.bf16.msra.mxu1 %v1390_v15 }
  0xa9   :  { %227 = vmatpush.bf16.msra.mxu1 %v1389_v17 }
  0xad   :  { %479 = vmatpush.bf16.msrb.mxu1 %v1391_v16 }
  0xb4   :  { %1217 = vmatmul.msk.bf16.gmra.mxu1 %vm145_vm1, %v1561_v14 }
 0x121   :  { %v161_v18 = vpop.f32.mrf.mxu1 }
 0x122   :  { %v162_v20 = vadd.f32 %v1581_v19, %v161_v18 }
 0x124   :  { %v171_v23 = vmax.f32 %v162_v20, 0.0 }
 0x129   :  { %v163_v21 = vpop.f32.mrf.mxu1 }
 0x12a   :  { %v164_v22 = vadd.f32 %v1581_v19, %v163_v21 }
 0x12c   :  { %v172_v24 = vmax.f32 %v164_v22, 0.0 }
 0x12e   :  { %v175_v25 = vpack.c.bf16 %v172_v24, %v171_v23 }
 0x130   :  { %1232 = vmatmul.msk.bf16.vlgmr.msra.gmra.mxu1 %vm145_vm1, %v175_v25 }
 0x131   :  { %v166_v26 = vpop.f32.mrf.mxu1 }
 0x132   :  { %v167_v27 = vadd.f32 %v1581_v19, %v166_v26 }
 0x134   :  { %v173_v30 = vmax.f32 %v167_v27, 0.0 }
 0x139   :  { %v168_v28 = vpop.f32.mrf.mxu1 }
 0x13a   :  { %v169_v29 = vadd.f32 %v1581_v19, %v168_v28 }
 0x13c   :  { %v174_v31 = vmax.f32 %v169_v29, 0.0 }
 0x13e   :  { %v176_v32 = vpack.c.bf16 %v174_v31, %v173_v30 }
 0x140   :  { %1233 = vmatmul.msk.bf16.vlgmr.msra.gmra.mxu3 %vm145_vm1, %v176_v32 }
 0x1ad   :  { %v229_v35 = vpop.f32.mrf.mxu1 }
 0x1ae   :  { %v230_v36 = vadd.f32 %v229_v35, %v192_v33 }
 0x1b0   :  { %v1595_v37 = vadd.f32 %v1592_v34, %v230_v36 }
 0x1b2   :  { %324 = vrot.lane.b32.xlu0 %v1595_v37, %s1472_s23  ;;  %v1234_v50 = vmul.f32 -1.442695, %v1595_v37 }
 0x1b4   :  { %1424 = vpow2.f32 %v1234_v50 }
 0x1b5   :  { %v231_v39 = vpop.f32.mrf.mxu1 }
 0x1b6   :  { %v232_v40 = vadd.f32 %v231_v39, %v194_v38 }
 0x1b8   :  { %v1600_v41 = vadd.f32 %v1592_v34, %v232_v40 }
 0x1ba   :  { %326 = vrot.lane.b32.xlu0 %v1600_v41, %s1472_s23  ;;  %v1235_v51 = vmul.f32 -1.442695, %v1600_v41  ;;  %v1425_v52 = vpop.eup %1424 }
 0x1bb   :  { %v256_v53 = vadd.f32 1.0, %v1425_v52 }
 0x1bc   :  { %1426 = vpow2.f32 %v1235_v51 }
 0x1bd   :  { %1428 = vrcp.f32 %v256_v53  ;;  %v271_v10 = vand.u32 2147483648, %v256_v53  ;;  %vm265_vm3 = vweird.f32 %v256_v53  ;;  %v269_v12 = vand.u32 2147483647, %v256_v53 }
 0x1bf   :  { %v272_v18 = vor.u32 1.1754944e-38, %v271_v10  ;;  %vm270_vm5 = vcmp.eq.f32.partialorder %v269_v12, 8.507059e+37 }
 0x1c2   :  { %v1427_v54 = vpop.eup %1426 }
 0x1c3   :  { %v234_v43 = vpop.f32.mrf.mxu3  ;;  %v257_v55 = vadd.f32 1.0, %v1427_v54  ;;  %v1429_v57 = vpop.eup %1428 }
 0x1c4   :  { %v235_v44 = vadd.f32 %v234_v43, %v197_v42  ;;  %v261_v58 = vmul.f32 %v1429_v57, %v256_v53  ;;  %vm266_vm2 = vweird.f32 %v1429_v57 }
 0x1c5   :  { %1430 = vrcp.f32 %v257_v55  ;;  %vm267_vm4 = vmor %vm265_vm3, %vm266_vm2  ;;  %v286_v25 = vand.u32 2147483648, %v257_v55  ;;  %vm280_vm7 = vweird.f32 %v257_v55  ;;  %v284_v26 = vand.u32 2147483647, %v257_v55 }
 0x1c6   :  { %v1605_v45 = vadd.f32 %v1592_v34, %v235_v44  ;;  %v262_v60 = vsub.f32 1.0, %v261_v58 }
 0x1c7   :  { %v287_v29 = vor.u32 1.1754944e-38, %v286_v25  ;;  %vm285_vm9 = vcmp.eq.f32.partialorder %v284_v26, 8.507059e+37 }
 0x1c8   :  { %328 = vrot.lane.b32.xlu1 %v1605_v45, %s1472_s23  ;;  %v1236_v56 = vmul.f32 -1.442695, %v1605_v45  ;;  %v263_v63 = vmul.f32 %v1429_v57, %v262_v60 }
 0x1ca   :  { %1432 = vpow2.f32 %v1236_v56  ;;  %v264_v8 = vadd.f32 %v1429_v57, %v263_v63 }
 0x1cb   :  { %v236_v47 = vpop.f32.mrf.mxu3  ;;  %v1431_v61 = vpop.eup %1430 }
 0x1cc   :  { %v237_v48 = vadd.f32 %v236_v47, %v199_v46  ;;  %v276_v0 = vmul.f32 %v1431_v61, %v257_v55  ;;  %v268_v15 = vsel %vm267_vm4, %v1429_v57, %v264_v8  ;;  %vm281_vm6 = vweird.f32 %v1431_v61 }
 0x1cd   :  { %v1618_v22 = vsel %vm270_vm5, %v272_v18, %v268_v15  ;;  %vm282_vm8 = vmor %vm280_vm7, %vm281_vm6 }
 0x1ce   :  { %v1610_v49 = vadd.f32 %v1592_v34, %v237_v48  ;;  %v277_v9 = vsub.f32 1.0, %v276_v0 }
 0x1d0   :  { %330 = vrot.lane.b32.xlu1 %v1610_v49, %s1472_s23  ;;  %v1237_v59 = vmul.f32 -1.442695, %v1610_v49  ;;  %v1433_v62 = vpop.eup %1432  ;;  %v278_v16 = vmul.f32 %v1431_v61, %v277_v9 }
 0x1d1   :  { %v258_v7 = vadd.f32 1.0, %v1433_v62 }
 0x1d2   :  { %1434 = vpow2.f32 %v1237_v59  ;;  %v279_v24 = vadd.f32 %v1431_v61, %v278_v16 }
 0x1d3   :  { %1436 = vrcp.f32 %v258_v7  ;;  %v301_v42 = vand.u32 2147483648, %v258_v7  ;;  %vm295_vm11 = vweird.f32 %v258_v7  ;;  %v299_v43 = vand.u32 2147483647, %v258_v7 }
 0x1d4   :  { %v283_v28 = vsel %vm282_vm8, %v1431_v61, %v279_v24 }
 0x1d5   :  { %v1622_v32 = vsel %vm285_vm9, %v287_v29, %v283_v28  ;;  %v302_v47 = vor.u32 1.1754944e-38, %v301_v42  ;;  %vm300_vm13 = vcmp.eq.f32.partialorder %v299_v43, 8.507059e+37 }
 0x1d8   :  { %v1435_v11 = vpop.eup %1434 }
 0x1d9   :  { %v259_v17 = vadd.f32 1.0, %v1435_v11  ;;  %v1437_v20 = vpop.eup %1436  ;;  %v364_v11 = vsub.f32 1.0, %v1618_v22 }
 0x1da   :  { %v291_v27 = vmul.f32 %v1437_v20, %v258_v7  ;;  %vm296_vm10 = vweird.f32 %v1437_v20 }
 0x1db   :  { %1438 = vrcp.f32 %v259_v17  ;;  %vm297_vm12 = vmor %vm295_vm11, %vm296_vm10  ;;  %v316_v53 = vand.u32 2147483648, %v259_v17  ;;  %vm310_vm15 = vweird.f32 %v259_v17  ;;  %v314_v54 = vand.u32 2147483647, %v259_v17 }
 0x1dc   :  { %v292_v30 = vsub.f32 1.0, %v291_v27 }
 0x1dd   :  { %v317_v56 = vor.u32 1.1754944e-38, %v316_v53  ;;  %vm315_vm3 = vcmp.eq.f32.partialorder %v314_v54, 8.507059e+37 }
 0x1de   :  { %v293_v36 = vmul.f32 %v1437_v20, %v292_v30 }
 0x1e0   :  { %v294_v39 = vadd.f32 %v1437_v20, %v293_v36 }
 0x1e1   :  { %v1439_v31 = vpop.eup %1438 }
 0x1e2   :  { %v306_v38 = vmul.f32 %v1439_v31, %v259_v17  ;;  %v298_v44 = vsel %vm297_vm12, %v1437_v20, %v294_v39  ;;  %vm311_vm14 = vweird.f32 %v1439_v31 }
 0x1e3   :  { %v1626_v50 = vsel %vm300_vm13, %v302_v47, %v298_v44  ;;  %vm312_vm2 = vmor %vm310_vm15, %vm311_vm14 }
 0x1e4   :  { %v307_v40 = vsub.f32 1.0, %v306_v38  ;;  %v366_v24 = vsub.f32 1.0, %v1626_v50 }
 0x1e6   :  { %v308_v46 = vmul.f32 %v1439_v31, %v307_v40 }
 0x1e8   :  { %v309_v52 = vadd.f32 %v1439_v31, %v308_v46 }
 0x1ea   :  { %v313_v55 = vsel %vm312_vm2, %v1439_v31, %v309_v52 }
 0x1eb   :  { %v318_v57 = vsel %vm315_vm3, %v317_v56, %v313_v55 }
 0x1ec   :  { %v367_v27 = vsub.f32 1.0, %v318_v57 }
 0x224   :  { %v325_v21 = vpop.permute.xlu0 %324 }
 0x225   :  { %v336_v23 = vmul.f32 %v325_v21, %v1618_v22 }
 0x227   :  { %344 = vrot.lane.b32.xlu2 %v336_v23, %s1473_s24 }
 0x22c   :  { %v327_v33 = vpop.permute.xlu0 %326 }
 0x22d   :  { %v337_v35 = vmul.f32 %v327_v33, %v1622_v32 }
 0x22f   :  { %346 = vrot.lane.b32.xlu2 %v337_v35, %s1473_s24 }
 0x23a   :  { %v329_v48 = vpop.permute.xlu1 %328 }
 0x23b   :  { %v338_v51 = vmul.f32 %v329_v48, %v1626_v50 }
 0x23d   :  { %348 = vrot.lane.b32.xlu0 %v338_v51, %s1473_s24 }
 0x242   :  { %v331_v58 = vpop.permute.xlu1 %330 }
 0x243   :  { %v339_v59 = vmul.f32 %v331_v58, %v318_v57 }
 0x245   :  { %350 = vrot.lane.b32.xlu1 %v339_v59, %s1473_s24 }
 0x24d   :  { %392 = vrot.lane.b32.xlu1 %v1522_v1, %s1474_s25 }
 0x281   :  { %v345_v60 = vpop.permute.xlu2 %344 }
 0x282   :  { %v356_v61 = vadd.f32 %v345_v60, %v1595_v37 }
 0x284   :  { %1440 = vtanh.f32 %v356_v61 }
 0x289   :  { %v347_v62 = vpop.permute.xlu2 %346 }
 0x28a   :  { %v1441_v63 = vpop.eup %1440  ;;  %v357_v0 = vadd.f32 %v347_v62, %v1600_v41 }
 0x28b   :  { %372 = vrot.lane.b32.xlu2 %v1441_v63, %s1475_s26 }
 0x28c   :  { %1442 = vtanh.f32 %v357_v0 }
 0x292   :  { %v1443_v7 = vpop.eup %1442 }
 0x293   :  { %394 = vrot.lane.b32.xlu2 %v1527_v2, %s1474_s25  ;;  %374 = vrot.lane.b32.xlu0 %v1443_v7, %s1475_s26 }
 0x29b   :  { %396 = vrot.lane.b32.xlu2 %v1538_v4, %s1474_s25 }
 0x2af   :  { %v349_v1 = vpop.permute.xlu0 %348 }
 0x2b0   :  { %v358_v8 = vadd.f32 %v349_v1, %v1605_v45  ;;  %v365_v45 = vsub.f32 1.0, %v1622_v32 }
 0x2b2   :  { %1444 = vtanh.f32 %v358_v8 }
 0x2b7   :  { %v351_v37 = vpop.permute.xlu1 %350 }
 0x2b8   :  { %v1445_v9 = vpop.eup %1444  ;;  %v359_v10 = vadd.f32 %v351_v37, %v1610_v49 }
 0x2b9   :  { %376 = vrot.lane.b32.xlu0 %v1445_v9, %s1475_s26 }
 0x2ba   :  { %1446 = vtanh.f32 %v359_v10 }
 0x2bf   :  { %v393_v4 = vpop.permute.xlu1 %392 }
 0x2c0   :  { %v1447_v41 = vpop.eup %1446  ;;  %v404_v17 = vmul.f32 %v393_v4, %v1618_v22 }
 0x2c1   :  { %378 = vrot.lane.b32.xlu1 %v1447_v41, %s1475_s26  ;;  %398 = vrot.lane.b32.xlu0 %v1543_v5, %s1474_s25 }
 0x2e5   :  { %v373_v2 = vpop.permute.xlu2 %372 }
 0x2e6   :  { %v384_v15 = vmul.f32 %v373_v2, %v364_v11 }
 0x2e8   :  { %v1647_v20 = vadd.f32 %v404_v17, %v384_v15 }
 0x2ed   :  { %v395_v12 = vpop.permute.xlu2 %394 }
 0x2ee   :  { %v405_v49 = vmul.f32 %v395_v12, %v1622_v32 }
 0x2f5   :  { %v397_v25 = vpop.permute.xlu2 %396 }
 0x2f6   :  { %v406_v29 = vmul.f32 %v397_v25, %v1626_v50 }
 0x305   :  { %v375_v16 = vpop.permute.xlu0 %374 }
 0x306   :  { %v385_v18 = vmul.f32 %v375_v16, %v365_v45 }
 0x308   :  { %v1649_v21 = vadd.f32 %v405_v49, %v385_v18 }
 0x30a   :  { %v412_v5 = vpack.c.bf16 %v1649_v21, %v1647_v20 }
 0x30c   :  { %416 = vrot.lane.b32.xlu1 %v412_v5, %s1475_s26 }
 0x32b   :  { %v377_v23 = vpop.permute.xlu0 %376 }
 0x32c   :  { %v386_v26 = vmul.f32 %v377_v23, %v366_v24 }
 0x32e   :  { %v1656_v32 = vadd.f32 %v406_v29, %v386_v26 }
 0x333   :  { %v379_v28 = vpop.permute.xlu1 %378  ;;  %v399_v22 = vpop.permute.xlu0 %398 }
 0x334   :  { %v387_v30 = vmul.f32 %v379_v28, %v367_v27  ;;  %v407_v31 = vmul.f32 %v399_v22, %v318_v57 }
 0x336   :  { %v1658_v33 = vadd.f32 %v407_v31, %v387_v30 }
 0x338   :  { %v413_v35 = vpack.c.bf16 %v1658_v33, %v1656_v32 }
 0x33a   :  { %418 = vrot.lane.b32.xlu2 %v413_v35, %s1475_s26 }
 0x37e   :  { %v417_v36 = vpop.permute.xlu1 %416 }
 0x37f   :  { %1238 = vmatmul.msk.bf16.vlgmr.msrb.gmra.mxu0 %vm106_vm0, %v417_v36  ;;  %1242 = vmatmul.msk.bf16.vlgmr.msrb.gmra.mxu1 %vm106_vm0, %v417_v36 }
 0x394   :  { %v419_v38 = vpop.permute.xlu2 %418 }
 0x395   :  { %1239 = vmatmul.msk.bf16.gmra.mxu0 %vm106_vm0, %v419_v38  ;;  %1243 = vmatmul.msk.bf16.gmra.mxu1 %vm106_vm0, %v419_v38 }
 0x3fc   :  { %v435_v39 = vpop.f32.mrf.mxu0  ;;  %v481_v60 = vpop.f32.mrf.mxu1 }
 0x404   :  { %v437_v40 = vpop.f32.mrf.mxu0  ;;  %v483_v0 = vpop.f32.mrf.mxu1 }
 0x405   :  { %v445_v46 = vpack.c.bf16 %v437_v40, %v435_v39 }
 0x412   :  { %v440_v42 = vpop.f32.mrf.mxu0 }
 0x41a   :  { %v442_v43 = vpop.f32.mrf.mxu0 }
 0x41b   :  { %v446_v44 = vpack.c.bf16 %v442_v43, %v440_v42 }
 0x41d   :  { %453 = vmatpush.bf16.msrb.mxu2 %v446_v44 }
 0x421   :  { %454 = vmatpush.bf16.msrb.mxu2 %v445_v46 }
 0x424   :  { %1240 = vmatmul.msk.bf16.vlgmr.msrb.gmra.mxu2 %vm145_vm1, %v1554_v13 }
 0x434   :  { %1241 = vmatmul.msk.bf16.gmra.mxu2 %vm145_vm1, %v1561_v14 }
 0x4a7   :  { %v456_v47 = vpop.f32.mrf.mxu2 }
 0x4a8   :  { %v457_v48 = vadd.f32 %v1581_v19, %v456_v47 }
 0x4aa   :  { %v466_v52 = vmax.f32 %v457_v48, 0.0 }
 0x4af   :  { %v458_v50 = vpop.f32.mrf.mxu2 }
 0x4b0   :  { %v459_v51 = vadd.f32 %v1581_v19, %v458_v50 }
 0x4b2   :  { %v467_v53 = vmax.f32 %v459_v51, 0.0 }
 0x4b4   :  { %v470_v54 = vpack.c.bf16 %v467_v53, %v466_v52 }
 0x4b6   :  { %1244 = vmatmul.msk.bf16.vlgmr.msrb.gmra.mxu3 %vm145_vm1, %v470_v54 }
 0x4b7   :  { %v461_v55 = vpop.f32.mrf.mxu2 }
 0x4b8   :  { %v462_v56 = vadd.f32 %v1581_v19, %v461_v55 }
 0x4ba   :  { %v468_v58 = vmax.f32 %v462_v56, 0.0 }
 0x4bf   :  { %v463_v57 = vpop.f32.mrf.mxu2 }
 0x4c0   :  { %v464_v13 = vadd.f32 %v1581_v19, %v463_v57  ;;  %v486_v19 = vpop.f32.mrf.mxu1 }
 0x4c2   :  { %v469_v59 = vmax.f32 %v464_v13, 0.0 }
 0x4c4   :  { %v471_v14 = vpack.c.bf16 %v469_v59, %v468_v58 }
 0x4c6   :  { %1245 = vmatmul.msk.bf16.gmra.mxu3 %vm145_vm1, %v471_v14 }
 0x4c8   :  { %v488_v41 = vpop.f32.mrf.mxu1 }
 0x539   :  { %v506_v61 = vpop.f32.mrf.mxu3 }
 0x53a   :  { %v507_v62 = vadd.f32 %v506_v61, %v481_v60 }
 0x53c   :  { %v1678_v63 = vadd.f32 %v1592_v34, %v507_v62 }
 0x53e   :  { %600 = vrot.lane.b32.xlu0 %v1678_v63, %s1472_s23  ;;  %v1246_v15 = vmul.f32 -1.442695, %v1678_v63 }
 0x541   :  { %v508_v7 = vpop.f32.mrf.mxu3 }
 0x542   :  { %v509_v1 = vadd.f32 %v508_v7, %v483_v0 }
 0x544   :  { %v1683_v8 = vadd.f32 %v1592_v34, %v509_v1 }
 0x546   :  { %602 = vrot.lane.b32.xlu1 %v1683_v8, %s1472_s23  ;;  %v1247_v17 = vmul.f32 -1.442695, %v1683_v8 }
 0x549   :  { %v511_v37 = vpop.f32.mrf.mxu3 }
 0x54a   :  { %v512_v9 = vadd.f32 %v511_v37, %v486_v19 }
 0x54c   :  { %v1688_v10 = vadd.f32 %v1592_v34, %v512_v9 }
 0x54e   :  { %604 = vrot.lane.b32.xlu2 %v1688_v10, %s1472_s23  ;;  %v1248_v12 = vmul.f32 -1.442695, %v1688_v10 }
 0x550   :  { %1448 = vpow2.f32 %v1248_v12 }
 0x551   :  { %v513_v2 = vpop.f32.mrf.mxu3  ;;  %1450 = vpow2.f32 %v1246_v15 }
 0x552   :  { %v514_v11 = vadd.f32 %v513_v2, %v488_v41 }
 0x554   :  { %v1693_v4 = vadd.f32 %v1592_v34, %v514_v11 }
 0x556   :  { %606 = vrot.lane.b32.xlu0 %v1693_v4, %s1472_s23  ;;  %v1449_v45 = vpop.eup %1448  ;;  %v1249_v27 = vmul.f32 -1.442695, %v1693_v4 }
 0x557   :  { %v534_v16 = vadd.f32 1.0, %v1449_v45  ;;  %v1451_v49 = vpop.eup %1450 }
 0x558   :  { %v532_v18 = vadd.f32 1.0, %v1451_v49 }
 0x559   :  { %1452 = vrcp.f32 %v534_v16  ;;  %v577_v35 = vand.u32 2147483648, %v534_v16  ;;  %vm571_vm5 = vweird.f32 %v534_v16  ;;  %v575_v36 = vand.u32 2147483647, %v534_v16 }
 0x55a   :  { %1454 = vpow2.f32 %v1247_v17  ;;  %v547_v52 = vand.u32 2147483648, %v532_v18  ;;  %vm541_vm9 = vweird.f32 %v532_v18  ;;  %v545_v53 = vand.u32 2147483647, %v532_v18 }
 0x55b   :  { %1456 = vrcp.f32 %v532_v18  ;;  %v578_v43 = vor.u32 1.1754944e-38, %v577_v35  ;;  %vm576_vm7 = vcmp.eq.f32.partialorder %v575_v36, 8.507059e+37  ;;  %v1383_v35 = vld [vmem:[%s1928_s3 + $0x58] sm:$0xff] }
 0x55c   :  { %v548_v56 = vor.u32 1.1754944e-38, %v547_v52  ;;  %vm546_vm11 = vcmp.eq.f32.partialorder %v545_v53, 8.507059e+37  ;;  %v1392_v53 = vld [vmem:[%s1924_s5 + $0x20] sm:$0xff] }
 0x55d   :  { %710 = vmatpush.bf16.msra.mxu2 %v1392_v53  ;;  %v1374_v53 = vld [vmem:[%s1928_s3 + $0x10] sm:$0xff] }
 0x55f   :  { %v1453_v5 = vpop.eup %1452 }
 0x560   :  { %v1455_v34 = vpop.eup %1454  ;;  %v567_v23 = vmul.f32 %v1453_v5, %v534_v16  ;;  %vm572_vm4 = vweird.f32 %v1453_v5  ;;  %1254 = vmatmul.msk.bf16.vlgmr.msra.gmra.mxu2 %vm106_vm0, %v1531_v3 }
 0x561   :  { %v533_v24 = vadd.f32 1.0, %v1455_v34  ;;  %v1457_v26 = vpop.eup %1456  ;;  %vm573_vm6 = vmor %vm571_vm5, %vm572_vm4 }
 0x562   :  { %v568_v25 = vsub.f32 1.0, %v567_v23  ;;  %v537_v22 = vmul.f32 %v1457_v26, %v532_v18  ;;  %vm542_vm8 = vweird.f32 %v1457_v26 }
 0x563   :  { %1458 = vrcp.f32 %v533_v24  ;;  %vm543_vm10 = vmor %vm541_vm9, %vm542_vm8  ;;  %v562_v60 = vand.u32 2147483648, %v533_v24  ;;  %vm556_vm13 = vweird.f32 %v533_v24  ;;  %v560_v61 = vand.u32 2147483647, %v533_v24 }
 0x564   :  { %v569_v28 = vmul.f32 %v1453_v5, %v568_v25  ;;  %1460 = vpow2.f32 %v1249_v27  ;;  %v538_v30 = vsub.f32 1.0, %v537_v22 }
 0x565   :  { %v563_v7 = vor.u32 1.1754944e-38, %v562_v60  ;;  %vm561_vm15 = vcmp.eq.f32.partialorder %v560_v61, 8.507059e+37 }
 0x566   :  { %v570_v29 = vadd.f32 %v1453_v5, %v569_v28  ;;  %v539_v40 = vmul.f32 %v1457_v26, %v538_v30  ;;  %v1394_v28 = vld [vmem:[%s1924_s5 + $0x30] sm:$0xff] }
 0x567   :  { %1402 = vmatpush.bf16.msra.mxu3 %v1394_v28  ;;  %955 = vmatpush.bf16.msra.mxu0 %v1394_v28 }
 0x568   :  { %v574_v39 = vsel %vm573_vm6, %v1453_v5, %v570_v29  ;;  %v540_v50 = vadd.f32 %v1457_v26, %v539_v40  ;;  %vm796_vm6 = vcmask 523264  }
 0x569   :  { %v1459_v31 = vpop.eup %1458  ;;  %v1701_v47 = vsel %vm576_vm7, %v578_v43, %v574_v39 }
 0x56a   :  { %v1461_v38 = vpop.eup %1460  ;;  %v552_v42 = vmul.f32 %v1459_v31, %v533_v24  ;;  %v544_v54 = vsel %vm543_vm10, %v1457_v26, %v540_v50  ;;  %vm557_vm12 = vweird.f32 %v1459_v31 }
 0x56b   :  { %v535_v44 = vadd.f32 1.0, %v1461_v38  ;;  %v1705_v13 = vsel %vm546_vm11, %v548_v56, %v544_v54  ;;  %vm558_vm14 = vmor %vm556_vm13, %vm557_vm12 }
 0x56c   :  { %v553_v51 = vsub.f32 1.0, %v552_v42  ;;  %v640_v38 = vsub.f32 1.0, %v1705_v13  ;;  %v664_v43 = vmul.f32 %v1705_v13, %v1647_v20 }
 0x56d   :  { %1462 = vrcp.f32 %v535_v44  ;;  %v592_v11 = vand.u32 2147483648, %v535_v44  ;;  %vm586_vm3 = vweird.f32 %v535_v44  ;;  %v590_v12 = vand.u32 2147483647, %v535_v44 }
 0x56e   :  { %v554_v55 = vmul.f32 %v1459_v31, %v553_v51 }
 0x56f   :  { %v593_v45 = vor.u32 1.1754944e-38, %v592_v11  ;;  %vm591_vm5 = vcmp.eq.f32.partialorder %v590_v12, 8.507059e+37 }
 0x570   :  { %v555_v59 = vadd.f32 %v1459_v31, %v554_v55  ;;  %1255 = vmatmul.msk.bf16.gmra.mxu2 %vm106_vm0, %v1547_v6 }
 0x572   :  { %v559_v62 = vsel %vm558_vm14, %v1459_v31, %v555_v59  ;;  %v1382_v31 = vld [vmem:[%s1928_s3 + $0x50] sm:$0xff] }
 0x573   :  { %v1463_v14 = vpop.eup %1462  ;;  %v564_v19 = vsel %vm561_vm15, %v563_v7, %v559_v62  ;;  %v1386_v59 = vld [vmem:[%s1928_s3 + $0x70] sm:$0xff] }
 0x574   :  { %v582_v0 = vmul.f32 %v1463_v14, %v535_v44  ;;  %vm587_vm2 = vweird.f32 %v1463_v14  ;;  %v641_v40 = vsub.f32 1.0, %v564_v19  ;;  %v665_v44 = vmul.f32 %v564_v19, %v1649_v21 }
 0x575   :  { %vm588_vm4 = vmor %vm586_vm3, %vm587_vm2  ;;  %v642_v21 = vsub.f32 1.0, %v1701_v47 }
 0x576   :  { %v583_v9 = vsub.f32 1.0, %v582_v0 }
 0x578   :  { %v584_v41 = vmul.f32 %v1463_v14, %v583_v9 }
 0x57a   :  { %v585_v2 = vadd.f32 %v1463_v14, %v584_v41 }
 0x57c   :  { %v589_v15 = vsel %vm588_vm4, %v1463_v14, %v585_v2 }
 0x57d   :  { %v1710_v16 = vsel %vm591_vm5, %v593_v45, %v589_v15 }
 0x57e   :  { %v643_v55 = vsub.f32 1.0, %v1710_v16 }
 0x5a8   :  { %v605_v46 = vpop.permute.xlu2 %604 }
 0x5a9   :  { %v614_v48 = vmul.f32 %v605_v46, %v1701_v47 }
 0x5ab   :  { %624 = vrot.lane.b32.xlu0 %v614_v48, %s1473_s24  ;;  %v1385_v48 = vld [vmem:[%s1928_s3 + $0x68] sm:$0xff] }
 0x5b0   :  { %v601_v57 = vpop.permute.xlu0 %600 }
 0x5b1   :  { %v612_v58 = vmul.f32 %v601_v57, %v1705_v13  ;;  %v666_v57 = vmul.f32 %v1701_v47, %v1656_v32  ;;  %v667_v13 = vmul.f32 %v1710_v16, %v1658_v33  ;;  %v1775_v32 = vld [vmem:[%s1926_s6 + $0x4] ss:$0 sm:$0xff]  ;;  %v1387_v33 = vld [vmem:[%s1928_s3 + $0x78] sm:$0xff] }
 0x5b3   :  { %620 = vrot.lane.b32.xlu1 %v612_v58, %s1473_s24 }
 0x5b8   :  { %v603_v1 = vpop.permute.xlu1 %602 }
 0x5b9   :  { %v613_v37 = vmul.f32 %v603_v1, %v564_v19 }
 0x5bb   :  { %622 = vrot.lane.b32.xlu2 %v613_v37, %s1473_s24 }
 0x5c8   :  { %v607_v17 = vpop.permute.xlu0 %606 }
 0x5c9   :  { %v615_v49 = vmul.f32 %v607_v17, %v1710_v16 }
 0x5cb   :  { %626 = vrot.lane.b32.xlu1 %v615_v49, %s1473_s24 }
 0x615   :  { %v623_v18 = vpop.permute.xlu2 %622 }
 0x616   :  { %v633_v5 = vadd.f32 %v623_v18, %v1683_v8  ;;  %v1380_v8 = vld [vmem:[%s1928_s3 + $0x40] sm:$0xff] }
 0x617   :  { %1343 = vmatmul.msk.bf16.vlgmr.msra.gmra.mxu3 %vm106_vm0, %v1380_v8 }
 0x618   :  { %1464 = vtanh.f32 %v633_v5 }
 0x61d   :  { %v625_v34 = vpop.permute.xlu0 %624 }
 0x61e   :  { %v1465_v23 = vpop.eup %1464  ;;  %v634_v24 = vadd.f32 %v625_v34, %v1688_v10 }
 0x61f   :  { %650 = vrot.lane.b32.xlu0 %v1465_v23, %s1475_s26 }
 0x620   :  { %1466 = vtanh.f32 %v634_v24 }
 0x625   :  { %v621_v25 = vpop.permute.xlu1 %620 }
 0x626   :  { %v1467_v26 = vpop.eup %1466  ;;  %v632_v27 = vadd.f32 %v621_v25, %v1678_v63  ;;  %v1381_v63 = vld [vmem:[%s1928_s3 + $0x48] sm:$0xff] }
 0x627   :  { %652 = vrot.lane.b32.xlu1 %v1467_v26, %s1475_s26  ;;  %1344 = vmatmul.msk.bf16.gmra.mxu3 %vm106_vm0, %v1381_v63 }
 0x628   :  { %1468 = vtanh.f32 %v632_v27 }
 0x62e   :  { %v1469_v10 = vpop.eup %1468 }
 0x62f   :  { %648 = vrot.lane.b32.xlu2 %v1469_v10, %s1475_s26 }
 0x637   :  { %1345 = vmatmul.msk.bf16.gmra.mxu3 %vm106_vm0, %v1382_v31  ;;  %v1372_v31 = vld [vmem:[%s1928_s3] sm:$0xff] }
 0x638   :  { %1335 = vmatmul.msk.bf16.vlgmr.msra.gmra.mxu0 %vm106_vm0, %v1372_v31 }
 0x63d   :  { %v627_v22 = vpop.permute.xlu1 %626 }
 0x63e   :  { %v635_v29 = vadd.f32 %v627_v22, %v1693_v4  ;;  %v1384_v4 = vld [vmem:[%s1928_s3 + $0x60] sm:$0xff] }
 0x640   :  { %1470 = vtanh.f32 %v635_v29 }
 0x646   :  { %v1471_v30 = vpop.eup %1470 }
 0x647   :  { %654 = vrot.lane.b32.xlu2 %v1471_v30, %s1475_s26  ;;  %1346 = vmatmul.msk.bf16.gmra.mxu3 %vm106_vm0, %v1383_v35 }
 0x657   :  { %1347 = vmatmul.msk.bf16.gmra.mxu3 %vm106_vm0, %v1384_v4 }
 0x667   :  { %1348 = vmatmul.msk.bf16.gmra.mxu3 %vm106_vm0, %v1385_v48  ;;  %v1813_v48 = vld [vmem:[%s1926_s6 + $0x2] ss:$0 sm:$0xff] }
 0x677   :  { %1349 = vmatmul.msk.bf16.gmra.mxu3 %vm106_vm0, %v1386_v59 }
 0x687   :  { %1350 = vmatmul.msk.bf16.gmra.mxu3 %vm106_vm0, %v1387_v33 }
 0x689   :  { %v649_v36 = vpop.permute.xlu2 %648 }
 0x68a   :  { %v660_v39 = vmul.f32 %v649_v36, %v640_v38 }
 0x68c   :  { %v668_v50 = vadd.f32 %v664_v43, %v660_v39  ;;  %v1393_v39 = vld [vmem:[%s1924_s5 + $0x28] sm:$0xff] }
 0x68d   :  { %770 = vmatpush.bf16.msrb.mxu2 %v1393_v39  ;;  %v1373_v43 = vld [vmem:[%s1928_s3 + $0x8] sm:$0xff] }
 0x68e   :  { %1336 = vmatmul.msk.bf16.gmra.mxu0 %vm106_vm0, %v1373_v43 }
 0x691   :  { %v651_v42 = vpop.permute.xlu0 %650 }
 0x692   :  { %v661_v46 = vmul.f32 %v651_v42, %v641_v40 }
 0x694   :  { %v669_v51 = vadd.f32 %v665_v44, %v661_v46  ;;  %v712_v46 = vpop.f32.mrf.mxu2 }
 0x696   :  { %v1407_v52 = vpack.i.bf16 %v669_v51, %v668_v50  ;;  %v713_v51 = vadd.f32 %v1813_v48, %v712_v46 }
 0x698   :  { %1408 = vrot.lane.b32.xlu0 %v1407_v52, %s1475_s26 }
 0x699   :  { %v653_v20 = vpop.permute.xlu1 %652 }
 0x69a   :  { %v662_v54 = vmul.f32 %v653_v20, %v642_v21  ;;  %v997_v61 = vpop.f32.mrf.mxu3  ;;  %v732_v20 = vmax.f32 %v713_v51, 0.0 }
 0x69b   :  { %v998_v47 = vadd.f32 %v1775_v32, %v997_v61 }
 0x69c   :  { %v670_v14 = vadd.f32 %v666_v57, %v662_v54  ;;  %v714_v52 = vpop.f32.mrf.mxu2 }
 0x69d   :  { %v1053_v0 = vmax.f32 %v998_v47, 0.0  ;;  %v715_v21 = vadd.f32 %v1813_v48, %v714_v52 }
 0x69e   :  { %1337 = vmatmul.msk.bf16.gmra.mxu0 %vm106_vm0, %v1374_v53 }
 0x69f   :  { %v733_v54 = vmax.f32 %v715_v21, 0.0 }
 0x6a1   :  { %v655_v56 = vpop.permute.xlu2 %654 }
 0x6a2   :  { %v663_v58 = vmul.f32 %v655_v56, %v643_v55  ;;  %v999_v62 = vpop.f32.mrf.mxu3  ;;  %v740_v56 = vpack.c.bf16 %v733_v54, %v732_v20 }
 0x6a3   :  { %v1000_v7 = vadd.f32 %v1775_v32, %v999_v62 }
 0x6a4   :  { %v671_v3 = vadd.f32 %v667_v13, %v663_v58  ;;  %v717_v57 = vpop.f32.mrf.mxu2 }
 0x6a5   :  { %v1054_v1 = vmax.f32 %v1000_v7, 0.0 }
 0x6a6   :  { %v1412_v60 = vpack.i.bf16 %v671_v3, %v670_v14  ;;  %v718_v3 = vadd.f32 %v1813_v48, %v717_v57 }
 0x6a7   :  { %v1783_v6 = vpack.c.bf16 %v1054_v1, %v1053_v0 }
 0x6a8   :  { %1413 = vrot.lane.b32.xlu1 %v1412_v60, %s1475_s26 }
 0x6aa   :  { %v1002_v19 = vpop.f32.mrf.mxu3 }
 0x6ab   :  { %v1003_v37 = vadd.f32 %v1775_v32, %v1002_v19  ;;  %v734_v19 = vmax.f32 %v718_v3, 0.0 }
 0x6ac   :  { %v719_v1 = vpop.f32.mrf.mxu2 }
 0x6ad   :  { %v1055_v41 = vmax.f32 %v1003_v37, 0.0  ;;  %v720_v37 = vadd.f32 %v1813_v48, %v719_v1 }
 0x6b2   :  { %v1004_v9 = vpop.f32.mrf.mxu3 }
 0x6b3   :  { %v1005_v2 = vadd.f32 %v1775_v32, %v1004_v9  ;;  %v1375_v9 = vld [vmem:[%s1928_s3 + $0x18] sm:$0xff] }
 0x6b4   :  { %1338 = vmatmul.msk.bf16.gmra.mxu0 %vm106_vm0, %v1375_v9 }
 0x6b5   :  { %v1056_v11 = vmax.f32 %v1005_v2, 0.0 }
 0x6b7   :  { %v1787_v12 = vpack.c.bf16 %v1056_v11, %v1055_v41  ;;  %v735_v11 = vmax.f32 %v720_v37, 0.0 }
 0x6ba   :  { %v1007_v15 = vpop.f32.mrf.mxu3 }
 0x6bb   :  { %v1008_v45 = vadd.f32 %v1775_v32, %v1007_v15 }
 0x6bd   :  { %v1057_v17 = vmax.f32 %v1008_v45, 0.0 }
 0x6c2   :  { %v1009_v16 = vpop.f32.mrf.mxu3 }
 0x6c3   :  { %v1010_v49 = vadd.f32 %v1775_v32, %v1009_v16 }
 0x6c5   :  { %v1058_v18 = vmax.f32 %v1010_v49, 0.0  ;;  %v741_v49 = vpack.c.bf16 %v735_v11, %v734_v19 }
 0x6c7   :  { %v1791_v5 = vpack.c.bf16 %v1058_v18, %v1057_v17 }
 0x6ca   :  { %v1012_v34 = vpop.f32.mrf.mxu3 }
 0x6cb   :  { %v1013_v23 = vadd.f32 %v1775_v32, %v1012_v34 }
 0x6cd   :  { %v1059_v25 = vmax.f32 %v1013_v23, 0.0 }
 0x6d2   :  { %v1014_v24 = vpop.f32.mrf.mxu3 }
 0x6d3   :  { %v1015_v26 = vadd.f32 %v1775_v32, %v1014_v24 }
 0x6d5   :  { %v1060_v27 = vmax.f32 %v1015_v26, 0.0  ;;  %v1377_v26 = vld [vmem:[%s1928_s3 + $0x28] sm:$0xff] }
 0x6d7   :  { %v1795_v28 = vpack.c.bf16 %v1060_v27, %v1059_v25  ;;  %v1376_v25 = vld [vmem:[%s1928_s3 + $0x20] sm:$0xff]  ;;  %v1379_v27 = vld [vmem:[%s1928_s3 + $0x38] sm:$0xff] }
 0x6d8   :  { %1339 = vmatmul.msk.bf16.gmra.mxu0 %vm106_vm0, %v1376_v25 }
 0x6da   :  { %v1017_v8 = vpop.f32.mrf.mxu3 }
 0x6db   :  { %v1018_v2 = vadd.f32 %v1775_v32, %v1017_v8 }
 0x6dd   :  { %v1061_v18 = vmax.f32 %v1018_v2, 0.0 }
 0x6e2   :  { %v1019_v30 = vpop.f32.mrf.mxu3 }
 0x6e3   :  { %v1020_v15 = vadd.f32 %v1775_v32, %v1019_v30 }
 0x6e5   :  { %v1062_v34 = vmax.f32 %v1020_v15, 0.0 }
 0x6e7   :  { %v1081_v24 = vpack.c.bf16 %v1062_v34, %v1061_v18  ;;  %v1421_v34 = vld [vmem:[%s1926_s6 + $0x3] ss:$0 sm:$0xff] }
 0x6e8   :  { %1340 = vmatmul.msk.bf16.gmra.mxu0 %vm106_vm0, %v1377_v26 }
 0x6ea   :  { %v1022_v35 = vpop.f32.mrf.mxu3 }
 0x6eb   :  { %v1023_v33 = vadd.f32 %v1775_v32, %v1022_v35 }
 0x6ed   :  { %v1063_v45 = vmax.f32 %v1023_v33, 0.0 }
 0x6f2   :  { %v1024_v42 = vpop.f32.mrf.mxu3 }
 0x6f3   :  { %v1025_v47 = vadd.f32 %v1775_v32, %v1024_v42 }
 0x6f5   :  { %v1064_v16 = vmax.f32 %v1025_v47, 0.0 }
 0x6f7   :  { %v1082_v23 = vpack.c.bf16 %v1064_v16, %v1063_v45 }
 0x6fa   :  { %v1027_v44 = vpop.f32.mrf.mxu3 }
 0x6fb   :  { %v1028_v58 = vadd.f32 %v1775_v32, %v1027_v44 }
 0x6fd   :  { %v1065_v62 = vmax.f32 %v1028_v58, 0.0 }
 0x702   :  { %v1029_v50 = vpop.f32.mrf.mxu3 }
 0x703   :  { %v1030_v59 = vadd.f32 %v1775_v32, %v1029_v50 }
 0x705   :  { %v1066_v0 = vmax.f32 %v1030_v59, 0.0 }
 0x707   :  { %v1083_v17 = vpack.c.bf16 %v1066_v0, %v1065_v62 }
 0x70a   :  { %v1409_v10 = vpop.permute.xlu0 %1408  ;;  %v1032_v55 = vpop.f32.mrf.mxu3 }
 0x70b   :  { %v1411_v63 = vunpack.i.h.bf16 %v1409_v10  ;;  %v1410_v22 = vunpack.i.l.bf16 %v1409_v10  ;;  %v1033_v13 = vadd.f32 %v1775_v32, %v1032_v55 }
 0x70d   :  { %v688_v29 = vpack.c.bf16 %v1411_v63, %v1410_v22  ;;  %v1067_v60 = vmax.f32 %v1033_v13, 0.0 }
 0x70f   :  { %1256 = vmatmul.msk.bf16.gmra.mxu2 %vm106_vm0, %v688_v29 }
 0x712   :  { %v1034_v14 = vpop.f32.mrf.mxu3 }
 0x713   :  { %v1035_v61 = vadd.f32 %v1775_v32, %v1034_v14 }
 0x715   :  { %v1068_v7 = vmax.f32 %v1035_v61, 0.0 }
 0x717   :  { %v1084_v41 = vpack.c.bf16 %v1068_v7, %v1067_v60 }
 0x719   :  { %1105 = vmatpush.bf16.msrb.mxu0 %v1084_v41 }
 0x71a   :  { %v1414_v4 = vpop.permute.xlu1 %1413 }
 0x71b   :  { %v1416_v36 = vunpack.i.h.bf16 %v1414_v4  ;;  %v1415_v38 = vunpack.i.l.bf16 %v1414_v4 }
 0x71d   :  { %v689_v40 = vpack.c.bf16 %v1416_v36, %v1415_v38  ;;  %1106 = vmatpush.bf16.msrb.mxu0 %v1083_v17 }
 0x71f   :  { %1257 = vmatmul.msk.bf16.gmra.mxu2 %vm106_vm0, %v689_v40 }
 0x721   :  { %1107 = vmatpush.bf16.msrb.mxu0 %v1082_v23 }
 0x725   :  { %1108 = vmatpush.bf16.msrb.mxu0 %v1081_v24 }
 0x729   :  { %1109 = vmatpush.bf16.msrb.mxu0 %v1795_v28 }
 0x72d   :  { %1110 = vmatpush.bf16.msrb.mxu0 %v1791_v5  ;;  %v1378_v5 = vld [vmem:[%s1928_s3 + $0x30] sm:$0xff] }
 0x72e   :  { %1341 = vmatmul.msk.bf16.gmra.mxu0 %vm106_vm0, %v1378_v5 }
 0x72f   :  { %1262 = vmatmul.msk.bf16.vlgmr.msrb.gmra.mxu2 %vm106_vm0, %v740_v56 }
 0x731   :  { %1111 = vmatpush.bf16.msrb.mxu0 %v1787_v12 }
 0x735   :  { %1112 = vmatpush.bf16.msrb.mxu0 %v1783_v6  ;;  %v957_v6 = vpop.f32.mrf.mxu0 }
 0x736   :  { %v958_v10 = vadd.f32 %v1775_v32, %v957_v6 }
 0x738   :  { %v1037_v31 = vmax.f32 %v958_v10, 0.0 }
 0x73d   :  { %v959_v30 = vpop.f32.mrf.mxu0 }
 0x73e   :  { %1342 = vmatmul.msk.bf16.gmra.mxu0 %vm106_vm0, %v1379_v27  ;;  %v960_v35 = vadd.f32 %v1775_v32, %v959_v30  ;;  %v68_v27 = vld [vmem:[%s1929_s4] sm:$0xff] }
 0x73f   :  { %1263 = vmatmul.msk.bf16.gmra.mxu2 %vm106_vm0, %v741_v49 }
 0x740   :  { %v1038_v36 = vmax.f32 %v960_v35, 0.0 }
 0x742   :  { %v1862_v39 = vpack.c.bf16 %v1038_v36, %v1037_v31 }
 0x745   :  { %v962_v40 = vpop.f32.mrf.mxu0 }
 0x746   :  { %v963_v44 = vadd.f32 %v1775_v32, %v962_v40 }
 0x748   :  { %v1039_v53 = vmax.f32 %v963_v44, 0.0 }
 0x74d   :  { %v964_v52 = vpop.f32.mrf.mxu0 }
 0x74e   :  { %v965_v20 = vadd.f32 %v1775_v32, %v964_v52 }
 0x750   :  { %v1040_v54 = vmax.f32 %v965_v20, 0.0  ;;  %v1395_v20 = vld [vmem:[%s1924_s5 + $0x38] sm:$0xff] }
 0x751   :  { %1164 = vmatpush.bf16.msra.mxu2 %v1395_v20 }
 0x752   :  { %v1869_v55 = vpack.c.bf16 %v1040_v54, %v1039_v53  ;;  %v35_v53 = vld [vmem:[%s1930_s2] sm:$0xf] }
 0x755   :  { %v967_v56 = vpop.f32.mrf.mxu0 }
 0x756   :  { %v968_v57 = vadd.f32 %v1775_v32, %v967_v56 }
 0x758   :  { %v1041_v58 = vmax.f32 %v968_v57, 0.0 }
 0x75d   :  { %v969_v13 = vpop.f32.mrf.mxu0 }
 0x75e   :  { %v970_v59 = vadd.f32 %v1775_v32, %v969_v13 }
 0x765   :  { %v972_v3 = vpop.f32.mrf.mxu0 }
 0x766   :  { %v973_v60 = vadd.f32 %v1775_v32, %v972_v3 }
 0x768   :  { %v1043_v33 = vmax.f32 %v973_v60, 0.0  ;;  %v1086_v60 = vunpack.c.l.b16 %v68_v27 }
 0x76d   :  { %v974_v61 = vpop.f32.mrf.mxu0 }
 0x76e   :  { %v975_v47 = vadd.f32 %v1775_v32, %v974_v61  ;;  %v1088_v61 = vpack.c.b16 %v1086_v60, %v1086_v60 }
 0x770   :  { %v1044_v62 = vmax.f32 %v975_v47, 0.0  ;;  %v1396_v47 = vld [vmem:[%s1924_s5 + $0x40] sm:$0xff] }
 0x772   :  { %v1877_v0 = vpack.c.bf16 %v1044_v62, %v1043_v33 }
 0x775   :  { %v977_v7 = vpop.f32.mrf.mxu0 }
 0x77d   :  { %v979_v19 = vpop.f32.mrf.mxu0 }
 0x77e   :  { %v980_v54 = vadd.f32 %v1775_v32, %v979_v19 }
 0x785   :  { %v982_v9 = vpop.f32.mrf.mxu0 }
 0x786   :  { %v983_v44 = vadd.f32 %v1775_v32, %v982_v9 }
 0x788   :  { %v1047_v56 = vmax.f32 %v983_v44, 0.0 }
 0x78d   :  { %v984_v2 = vpop.f32.mrf.mxu0 }
 0x792   :  { %v722_v12 = vpop.f32.mrf.mxu2 }
 0x793   :  { %v723_v28 = vadd.f32 %v1813_v48, %v722_v12 }
 0x795   :  { %v736_v22 = vmax.f32 %v723_v28, 0.0  ;;  %v1087_v28 = vunpack.c.h.b16 %v68_v27 }
 0x797   :  { %v1089_v30 = vpack.c.b16 %v1087_v28, %v1087_v28 }
 0x799   :  { %1113 = vmatmul.bf16.vlgmr.msrb.gmra.mxu0 %v1089_v30 }
 0x79a   :  { %v724_v8 = vpop.f32.mrf.mxu2 }
 0x79b   :  { %v725_v63 = vadd.f32 %v1813_v48, %v724_v8 }
 0x79d   :  { %v737_v29 = vmax.f32 %v725_v63, 0.0 }
 0x79f   :  { %v742_v4 = vpack.c.bf16 %v737_v29, %v736_v22 }
 0x7a1   :  { %1264 = vmatmul.msk.bf16.gmra.mxu2 %vm106_vm0, %v742_v4 }
 0x7a2   :  { %v727_v38 = vpop.f32.mrf.mxu2 }
 0x7a3   :  { %v728_v42 = vadd.f32 %v1813_v48, %v727_v38 }
 0x7a5   :  { %v738_v50 = vmax.f32 %v728_v42, 0.0 }
 0x7aa   :  { %v729_v43 = vpop.f32.mrf.mxu2 }
 0x7ab   :  { %v730_v46 = vadd.f32 %v1813_v48, %v729_v43  ;;  %v1042_v48 = vmax.f32 %v970_v59, 0.0  ;;  %v987_v15 = vpop.f32.mrf.mxu0  ;;  %v1046_v59 = vmax.f32 %v980_v54, 0.0 }
 0x7ac   :  { %v988_v36 = vadd.f32 %v1775_v32, %v987_v15 }
 0x7ad   :  { %v739_v51 = vmax.f32 %v730_v46, 0.0  ;;  %v1873_v14 = vpack.c.bf16 %v1042_v48, %v1041_v58  ;;  %v985_v46 = vadd.f32 %v1775_v32, %v984_v2  ;;  %v1422_v2 = vld [vmem:[%s1926_s6 + $0x5] ss:$0 sm:$0xff] }
 0x7af   :  { %v743_v21 = vpack.c.bf16 %v739_v51, %v738_v50  ;;  %v1049_v50 = vmax.f32 %v988_v36, 0.0  ;;  %v1048_v57 = vmax.f32 %v985_v46, 0.0 }
 0x7b1   :  { %1265 = vmatmul.msk.bf16.gmra.mxu2 %vm106_vm0, %v743_v21  ;;  %v978_v21 = vadd.f32 %v1775_v32, %v977_v7  ;;  %v1074_v48 = vpack.c.bf16 %v1048_v57, %v1047_v56 }
 0x7b2   :  { %v772_v1 = vpop.f32.mrf.mxu2 }
 0x7b3   :  { %v989_v17 = vpop.f32.mrf.mxu0  ;;  %v773_v31 = vadd.f32 %v1421_v34, %v772_v1  ;;  %v1045_v58 = vmax.f32 %v978_v21, 0.0 }
 0x7b4   :  { %v990_v38 = vadd.f32 %v1775_v32, %v989_v17 }
 0x7b5   :  { %v1073_v3 = vpack.c.bf16 %v1046_v59, %v1045_v58 }
 0x7b6   :  { %v1050_v51 = vmax.f32 %v990_v38, 0.0 }
 0x7b8   :  { %v1075_v13 = vpack.c.bf16 %v1050_v51, %v1049_v50 }
 0x7ba   :  { %v774_v37 = vpop.f32.mrf.mxu2 }
 0x7bb   :  { %v992_v18 = vpop.f32.mrf.mxu0  ;;  %v775_v35 = vadd.f32 %v1421_v34, %v774_v37  ;;  %v1398_v37 = vld [vmem:[%s1924_s5 + $0x50] sm:$0xff] }
 0x7bc   :  { %v993_v22 = vadd.f32 %v1775_v32, %v992_v18  ;;  %v1423_v18 = vld [vmem:[%s1926_s6 + $0x6] ss:$0 sm:$0xff] }
 0x7bd   :  { %v792_v43 = vpack.c.bf16 %v775_v35, %v773_v31 }
 0x7be   :  { %v1051_v40 = vmax.f32 %v993_v22, 0.0 }
 0x7c2   :  { %v777_v41 = vpop.f32.mrf.mxu2 }
 0x7c3   :  { %v994_v6 = vpop.f32.mrf.mxu0  ;;  %v778_v8 = vadd.f32 %v1421_v34, %v777_v41 }
 0x7c4   :  { %v995_v29 = vadd.f32 %v1775_v32, %v994_v6  ;;  %v1397_v32 = vld [vmem:[%s1924_s5 + $0x48] sm:$0xff] }
 0x7c6   :  { %v1052_v42 = vmax.f32 %v995_v29, 0.0 }
 0x7c8   :  { %v1076_v52 = vpack.c.bf16 %v1052_v42, %v1051_v40 }
 0x7ca   :  { %v779_v11 = vpop.f32.mrf.mxu2 }
 0x7cb   :  { %v780_v10 = vadd.f32 %v1421_v34, %v779_v11 }
 0x7cd   :  { %v793_v4 = vpack.c.bf16 %v780_v10, %v778_v8 }
 0x816   :  { %v1114_v33 = vpop.f32.mrf.mxu0 }
 0x81e   :  { %v1116_v62 = vpop.f32.mrf.mxu0 }
 0x824   :  { %v782_v45 = vpop.f32.mrf.mxu2 }
 0x825   :  { %v783_v12 = vadd.f32 %v1421_v34, %v782_v45 }
 0x82c   :  { %v784_v16 = vpop.f32.mrf.mxu2 }
 0x82d   :  { %v785_v26 = vadd.f32 %v1421_v34, %v784_v16 }
 0x82f   :  { %v794_v63 = vpack.c.bf16 %v785_v26, %v783_v12 }
 0x834   :  { %v787_v49 = vpop.f32.mrf.mxu2 }
 0x835   :  { %v788_v24 = vadd.f32 %v1421_v34, %v787_v49 }
 0x83c   :  { %v789_v23 = vpop.f32.mrf.mxu2 }
 0x83d   :  { %v790_v25 = vadd.f32 %v1421_v34, %v789_v23 }
 0x83f   :  { %v795_v5 = vpack.c.bf16 %v790_v25, %v788_v24 }
 0x841   :  { %804 = vmatpush.bf16.msra.mxu1 %v795_v5 }
 0x845   :  { %805 = vmatpush.bf16.msra.mxu1 %v794_v63 }
 0x849   :  { %806 = vmatpush.bf16.msra.mxu1 %v793_v4 }
 0x84d   :  { %807 = vmatpush.bf16.msra.mxu1 %v792_v43 }
 0x850   :  { %1266 = vmatmul.msk.bf16.vlgmr.msra.gmra.mxu1 %vm796_vm6, %v35_v53 }
 0x851   :  { %1092 = vmatpush.bf16.msrb.mxu1 %v1076_v52 }
 0x855   :  { %1093 = vmatpush.bf16.msrb.mxu1 %v1075_v13 }
 0x859   :  { %1094 = vmatpush.bf16.msrb.mxu1 %v1074_v48 }
 0x85d   :  { %1095 = vmatpush.bf16.msrb.mxu1 %v1073_v3 }
 0x861   :  { %1096 = vmatpush.bf16.msrb.mxu1 %v1877_v0 }
 0x865   :  { %1097 = vmatpush.bf16.msrb.mxu1 %v1873_v14 }
 0x869   :  { %1098 = vmatpush.bf16.msrb.mxu1 %v1869_v55 }
 0x86d   :  { %1099 = vmatpush.bf16.msrb.mxu1 %v1862_v39 }
 0x870   :  { %1100 = vmatmul.bf16.vlgmr.msrb.gmra.mxu1 %v1088_v61 }
 0x871   :  { %1141 = vmatpush.bf16.msra.mxu1 %v1397_v32 }
 0x875   :  { %1142 = vmatpush.bf16.msra.mxu1 %v1396_v47 }
 0x879   :  { %1191 = vmatpush.bf16.msrb.mxu1 %v1398_v37 }
 0x8cd   :  { %v809_v0 = vpop.f32.mrf.mxu1 }
 0x8ce   :  { %v1118_v14 = vpack.c.bf16 %v809_v0, %v809_v0 }
 0x8d0   :  { %1364 = vmatmul.msk.bf16.vlgmr.msra.gmra.mxu2 %vm106_vm0, %v1118_v14 }
 0x8d5   :  { %v811_v55 = vpop.f32.mrf.mxu1 }
 0x8ed   :  { %v1101_v7 = vpop.f32.mrf.mxu1 }
 0x8ee   :  { %v1115_v39 = vadd.f32 %v1114_v33, %v1101_v7 }
 0x8f0   :  { %v1119_v1 = vpack.c.bf16 %v1115_v39, %v1115_v39 }
 0x8f2   :  { %1359 = vmatmul.msk.bf16.vlgmr.msra.gmra.mxu1 %vm145_vm1, %v1119_v1 }
 0x8f5   :  { %v1103_v19 = vpop.f32.mrf.mxu1 }
 0x953   :  { %v1166_v9 = vpop.f32.mrf.mxu2 }
 0x95b   :  { %v1168_v41 = vpop.f32.mrf.mxu2 }
 0x96f   :  { %v1144_v11 = vpop.f32.mrf.mxu1 }
 0x970   :  { %v1167_v15 = vadd.f32 %v1166_v9, %v1144_v11 }
 0x972   :  { %v1171_v45 = vadd.f32 %v1422_v2, %v1167_v15 }
 0x974   :  { %v1172_v16 = vmax.f32 %v1171_v45, 0.0 }
 0x976   :  { %v1173_v17 = vpack.c.bf16 %v1172_v16, %v1172_v16 }
 0x977   :  { %v1146_v49 = vpop.f32.mrf.mxu1 }
 0x978   :  { %1369 = vmatmul.msk.bf16.vlgmr.msrb.gmra.mxu1 %vm106_vm0, %v1173_v17 }
 0x9f5   :  { %v1193_v34 = vpop.f32.mrf.mxu1 }
 0x9f6   :  { %v1194_v23 = vadd.f32 %v1423_v18, %v1193_v34 }
 0x9f8   :  { %1197 = vst [vmem:[%s1931_s7] sm:$0xff] %v1194_v23 }
 0x9fd   :  { %v1195_v24 = vpop.f32.mrf.mxu1 }

</bundles_post_ra>
